<compile_context>
chip_gen: v7x
topology: tpu7x:2x2x1
jax: 0.10.0
libtpu: 0.0.40
codegen_flags: <defaults>
</compile_context>

<pallas_src>
import jax
import jax.numpy as jnp
from jax import lax
from jax.experimental import pallas as pl
from jax.experimental.pallas import tpu as pltpu


def _round_up(x, m):
    return ((x + m - 1) // m) * m


def _pad_to(w, axis, new_size):
    pad = [(0, 0)] * w.ndim
    pad[axis] = (0, new_size - w.shape[axis])
    return jnp.pad(w, pad)


def _pad_gate_cols(w, H, Hp):
    """(..., 4*H) -> (..., 4*Hp): each [i,f,g,o] block zero-padded to Hp lanes."""
    pad = [(0, 0)] * (w.ndim - 1) + [(0, Hp - H)]
    return jnp.concatenate(
        [jnp.pad(w[..., k * H:(k + 1) * H], pad) for k in range(4)], axis=-1)


def _default_bf16_gates():
    """bf16 gate nonlinearities on v6e / v7x (bf16 EUP/VPU); f32 elsewhere."""
    try:
        kind = jax.devices()[0].device_kind.lower()
    except Exception:
        return False
    return ("v6" in kind) or ("v7" in kind)


def _make_lstm_fc_kernel(T, L, Bp, H, Hs, Gp, packed_small, bf16_gates):
    """Builds the fused LSTM + FC kernel.

    Padded shapes seen by the kernel:
      x:         (T*Bp, Din) bf16      h0/c0:     (L, Bp, Hs) f32
      w_ih0:     (Din, Gp)   bf16      w_ih_rest: (max(L-1,1), Hs, Gp) bf16
      w_hh:      (L, Hs, Gp) bf16      b:         (L, 1, Gp) f32 (b_ih + b_hh)
      fc_w:      (Hs, Cp)    bf16      fc_b:      (1, Cp) f32
      probs:     (Bp, Cp)    f32       hN/cN:     (L, Bp, Hs) f32
      seq_buf:   (T*Bp, Hs)  f32       gate_buf:  (T*Bp, Gp) f32
    Gate order matches nn.LSTM: [i, f, g, o].
    packed_small: gates packed in one 128-lane slab (4*H <= 128), h/c carried
    at Hs=128 lanes; otherwise each gate block is padded to Hs (multiple of 128).
    """

    def kernel(x_ref, h0_ref, c0_ref,
               w_ih0_ref, w_ih_rest_ref, w_hh_ref, b_ref,
               fc_w_ref, fc_b_ref,
               probs_ref, hN_ref, cN_ref,
               seq_buf, gate_buf):
        h_last = None
        for l in range(L):                                    # static layer loop
            # ---- hoisted input projection + bias: ONE batched MXU matmul per
            #      layer over the whole sequence, off the serial per-step path.
            if l == 0:
                x_all = x_ref[...]                            # (T*Bp, Din) bf16
                w_ih = w_ih0_ref[...]
            else:
                x_all = seq_buf[...].astype(jnp.bfloat16)     # (T*Bp, Hs)
                w_ih = w_ih_rest_ref[l - 1]
            gate_buf[...] = (
                jnp.dot(x_all, w_ih, preferred_element_type=jnp.float32)
                + b_ref[l])                                   # bias folded once

            w_hh = w_hh_ref[l]                                # hoisted
            write_seq = l < L - 1                             # last layer: unread

            def step(t, carry, w_hh=w_hh, write_seq=write_seq):
                h, c = carry                                  # f32 (Bp, Hs)
                row = pl.multiple_of(t * Bp, 8)
                # only the recurrent matmul stays serial (bf16 ops, f32 acc)
                gates = gate_buf[pl.ds(row, Bp), :] + jnp.dot(
                    h.astype(jnp.bfloat16), w_hh,
                    preferred_element_type=jnp.float32)       # (Bp, Gp)
                ga = gates.astype(jnp.bfloat16) if bf16_gates else gates
                if packed_small:
                    # ONE sigmoid + ONE tanh over the packed [i|f|g|o] vreg,
                    # then re-align f/g/o quarters onto h/c lanes via XLU rolls.
                    sig = jax.nn.sigmoid(ga).astype(jnp.float32)
                    tnh = jnp.tanh(ga).astype(jnp.float32)
                    i_g = sig                                           # lanes [0,H)
                    f_g = pltpu.roll(sig, shift=Gp - H, axis=1)         # f -> [0,H)
                    g_g = pltpu.roll(tnh, shift=Gp - 2 * H, axis=1)     # g -> [0,H)
                    o_g = pltpu.roll(sig, shift=Gp - 3 * H, axis=1)     # o -> [0,H)
                else:
                    # lane-aligned gate blocks (Hs multiple of 128)
                    i_g = jax.nn.sigmoid(ga[:, 0 * Hs:1 * Hs]).astype(jnp.float32)
                    f_g = jax.nn.sigmoid(ga[:, 1 * Hs:2 * Hs]).astype(jnp.float32)
                    g_g = jnp.tanh(ga[:, 2 * Hs:3 * Hs]).astype(jnp.float32)
                    o_g = jax.nn.sigmoid(ga[:, 3 * Hs:4 * Hs]).astype(jnp.float32)
                c_new = f_g * c + i_g * g_g                   # f32 state math
                h_new = o_g * jnp.tanh(c_new)
                if write_seq:
                    seq_buf[pl.ds(row, Bp), :] = h_new        # feed next layer
                return (h_new, c_new)

            # T=8 static: full unroll for LLO visibility.
            # TODO(synk): partial unroll (e.g. unroll=8) for large T.
            h_fin, c_fin = lax.fori_loop(0, T, step, (h0_ref[l], c0_ref[l]),
                                         unroll=True)
            hN_ref[l] = h_fin
            cN_ref[l] = c_fin
            h_last = h_fin                                    # lstm_out[:, -1, :]

        logits = (jnp.dot(h_last.astype(jnp.bfloat16), fc_w_ref[...],
                          preferred_element_type=jnp.float32) + fc_b_ref[...])
        probs_ref[...] = jax.nn.sigmoid(logits)               # lane-dense (Bp, Cp)

    return kernel


def embedding_lstm_forward(params, pc, delta, h_c_state, top_pred_num,
                           bf16_gate_nonlinearities=None):
    # --- glue: embedding lookup + concat (matches torch.cat(dim=2).float()) ---
    pc_e = jnp.take(params["pc_embed"], pc, axis=0)            # (B,T,E)
    d_e = jnp.take(params["delta_embed"], delta, axis=0)       # (B,T,E)
    x = jnp.concatenate([pc_e, d_e], axis=2).astype(jnp.float32)   # (B,T,Din)

    h0, c0 = h_c_state
    L, B, H = h0.shape
    _, T, Din = x.shape
    C = params["fc_w"].shape[1]

    if bf16_gate_nonlinearities is None:
        bf16_gate_nonlinearities = _default_bf16_gates()

    B_pad = _round_up(max(B, 1), 8)          # sublane-align batch
    C_pad = _round_up(max(C, 1), 128)        # lane-dense probs output

    packed_small = (4 * H) <= 128
    if packed_small:
        # [i|f|g|o] packed in a single 128-lane slab; h/c carried at 128 lanes.
        Gp = 128
        Hs = 128
        prep_gates = lambda w: _pad_to(w, w.ndim - 1, Gp)
    else:
        # general fallback: each gate block padded to a lane-aligned width
        Hs = _round_up(H, 128)
        Gp = 4 * Hs
        prep_gates = lambda w: _pad_gate_cols(w, H, Hs)

    # time-major, batch padded, flattened to (T*B_pad, Din), bf16 MXU operand
    x_tm = jnp.transpose(x, (1, 0, 2))                                   # (T,B,Din)
    x_p = _pad_to(x_tm, 1, B_pad).reshape(T * B_pad, Din).astype(jnp.bfloat16)

    h0_p = _pad_to(_pad_to(h0, 2, Hs), 1, B_pad)                         # f32
    c0_p = _pad_to(_pad_to(c0, 2, Hs), 1, B_pad)

    # weights: packed gate columns; zero rows above H null any garbage lanes.
    w_ih0_p = prep_gates(params["w_ih0"]).astype(jnp.bfloat16)           # (Din,Gp)
    w_ih_rest_p = _pad_to(prep_gates(params["w_ih_rest"]), 1, Hs).astype(jnp.bfloat16)
    w_hh_p = _pad_to(prep_gates(params["w_hh"]), 1, Hs).astype(jnp.bfloat16)
    b_p = prep_gates(params["b"])                                        # f32
    fc_w_p = _pad_to(_pad_to(params["fc_w"], 0, Hs), 1, C_pad).astype(jnp.bfloat16)
    fc_b_p = _pad_to(params["fc_b"], 1, C_pad)                           # f32

    kernel = _make_lstm_fc_kernel(T, L, B_pad, H, Hs, Gp,
                                  packed_small, bf16_gate_nonlinearities)

    vmem = pl.BlockSpec(memory_space=pltpu.MemorySpace.VMEM)
    scratch = [
        pltpu.VMEM((T * B_pad, Hs), jnp.float32),   # inter-layer h's
        pltpu.VMEM((T * B_pad, Gp), jnp.float32),   # hoisted gate slab (packed)
    ]

    # Scoped-VMEM request sized from actual resident slabs (+2x headroom),
    # floored at the smallest per-generation default so toy shapes never regress.
    F32, BF16 = 4, 2
    resident = (x_p.size * BF16 + (h0_p.size + c0_p.size) * F32
                + (w_ih0_p.size + w_ih_rest_p.size + w_hh_p.size
                   + fc_w_p.size) * BF16
                + (b_p.size + fc_b_p.size) * F32
                + (B_pad * C_pad + 2 * L * B_pad * Hs) * F32              # outputs
                + (T * B_pad * Hs + T * B_pad * Gp) * F32)                # scratch
    vmem_limit = max(16 * 1024 * 1024, 2 * int(resident) + (2 << 20))

    probs_p, hN_p, cN_p = pl.pallas_call(
        kernel,
        out_shape=(
            jax.ShapeDtypeStruct((B_pad, C_pad), jnp.float32),
            jax.ShapeDtypeStruct((L, B_pad, Hs), jnp.float32),
            jax.ShapeDtypeStruct((L, B_pad, Hs), jnp.float32),
        ),
        in_specs=[vmem] * 9,
        out_specs=(vmem, vmem, vmem),
        scratch_shapes=scratch,
        input_output_aliases={1: 1, 2: 2},   # padded h0 -> hN, c0 -> cN buffers
        compiler_params=pltpu.CompilerParams(vmem_limit_bytes=vmem_limit),
    )(x_p, h0_p, c0_p, w_ih0_p, w_ih_rest_p, w_hh_p, b_p, fc_w_p, fc_b_p)

    probs = probs_p[:B, :C]
    hN = hN_p[:, :B, :H]
    cN = cN_p[:, :B, :H]

    # --- glue: top-k predictions (sorted), matches torch.topk ---
    _, preds = lax.top_k(probs, top_pred_num)
    loss = None   # TODO(synk): CrossEntropyLoss-with-soft-target branch
    return preds, (hN, cN), loss, probs


def reference_forward(params, pc, delta, h_c_state, top_pred_num):
    """Pure-JAX f32 reference replicating PyTorch semantics (eval mode)."""
    pc_e = jnp.take(params["pc_embed"], pc, axis=0)
    d_e = jnp.take(params["delta_embed"], delta, axis=0)
    x = jnp.concatenate([pc_e, d_e], axis=2).astype(jnp.float32)   # (B,T,Din)
    h0, c0 = h_c_state
    L, B, H = h0.shape
    T = x.shape[1]
    layer_in = x
    hs, cs = [], []
    for l in range(L):
        w_ih = params["w_ih0"] if l == 0 else params["w_ih_rest"][l - 1]
        w_hh = params["w_hh"][l]
        b = params["b"][l]
        h, c = h0[l], c0[l]
        outs = []
        for t in range(T):
            g = layer_in[:, t, :] @ w_ih + h @ w_hh + b
            i = jax.nn.sigmoid(g[:, :H]); f = jax.nn.sigmoid(g[:, H:2 * H])
            gg = jnp.tanh(g[:, 2 * H:3 * H]); o = jax.nn.sigmoid(g[:, 3 * H:])
            c = f * c + i * gg
            h = o * jnp.tanh(c)
            outs.append(h)
        layer_in = jnp.stack(outs, axis=1)
        hs.append(h); cs.append(c)
    probs = jax.nn.sigmoid(layer_in[:, -1, :] @ params["fc_w"] + params["fc_b"])
    _, preds = lax.top_k(probs, top_pred_num)
    return preds, (jnp.stack(hs), jnp.stack(cs)), probs


def init_params(key, num_pc, num_delta_in, embed_dim, hidden_dim, num_layers):
    E, H = embed_dim, hidden_dim
    Din = 2 * E
    ks = jax.random.split(key, 8)
    s = 1.0 / (H ** 0.5)

    def u(k, shape):
        return jax.random.uniform(k, shape, jnp.float32, -s, s)

    return dict(
        pc_embed=jax.random.normal(ks[0], (num_pc, E), jnp.float32),
        delta_embed=jax.random.normal(ks[1], (num_delta_in, E), jnp.float32),
        w_ih0=u(ks[2], (Din, 4 * H)),                            # layer 0
        w_ih_rest=u(ks[3], (max(num_layers - 1, 1), H, 4 * H)),  # layers 1..L-1
        w_hh=u(ks[4], (num_layers, H, 4 * H)),
        b=u(ks[5], (num_layers, 1, 4 * H)),                      # b_ih + b_hh combined
        fc_w=u(ks[6], (H, num_delta_in)),
        fc_b=u(ks[7], (1, num_delta_in)),
    )


if __name__ == "__main__":
    # Module hyper-params (small, consistent with __init__)
    num_pc, num_delta_in = 64, 50
    embed_dim, hidden_dim = 16, 32
    num_layers, top_pred_num = 2, 5
    B, T = 2, 8

    key = jax.random.PRNGKey(0)
    kp, kx1, kx2, kh, kc = jax.random.split(key, 5)
    params = init_params(kp, num_pc, num_delta_in, embed_dim, hidden_dim, num_layers)

    pc = jax.random.randint(kx1, (B, T), 0, num_pc, dtype=jnp.int32)
    delta = jax.random.randint(kx2, (B, T), 0, num_delta_in, dtype=jnp.int32)
    h0 = jax.random.normal(kh, (num_layers, B, hidden_dim), jnp.float32) * 0.1
    c0 = jax.random.normal(kc, (num_layers, B, hidden_dim), jnp.float32) * 0.1

    preds, (hN, cN), loss, probs = embedding_lstm_forward(
        params, pc, delta, (h0, c0), top_pred_num)
    jax.block_until_ready((preds, hN, cN, probs))

    # Cross-check against pure-JAX f32 reference.  bf16 MXU operands plus bf16
    # gate nonlinearities (v6e/v7x) compound over T steps / L layers -> looser
    # tolerance than a pure-f32 kernel.
    preds_r, (hN_r, cN_r), probs_r = reference_forward(
        params, pc, delta, (h0, c0), top_pred_num)
    assert jnp.allclose(probs, probs_r, atol=4e-2, rtol=4e-2), "probs mismatch"
    assert jnp.allclose(hN, hN_r, atol=4e-2, rtol=4e-2), "h state mismatch"
    assert jnp.allclose(cN, cN_r, atol=4e-2, rtol=4e-2), "c state mismatch"
    assert preds.shape == (B, top_pred_num)
    assert loss is None

    print("KERNEL_OK")
</pallas_src>

<mosaic_0001>
module attributes {stable_mosaic.version = 11 : i64} {
  func.func @kernel(%arg0: memref<64x32xbf16, #tpu.memory_space<vmem>>, %arg1: memref<2x8x128xf32, #tpu.memory_space<vmem>>, %arg2: memref<2x8x128xf32, #tpu.memory_space<vmem>>, %arg3: memref<32x128xbf16, #tpu.memory_space<vmem>>, %arg4: memref<1x128x128xbf16, #tpu.memory_space<vmem>>, %arg5: memref<2x128x128xbf16, #tpu.memory_space<vmem>>, %arg6: memref<2x1x128xf32, #tpu.memory_space<vmem>>, %arg7: memref<128x128xbf16, #tpu.memory_space<vmem>>, %arg8: memref<1x128xf32, #tpu.memory_space<vmem>>, %arg9: memref<8x128xf32, #tpu.memory_space<vmem>>, %arg10: memref<2x8x128xf32, #tpu.memory_space<vmem>>, %arg11: memref<2x8x128xf32, #tpu.memory_space<vmem>>, %arg12: memref<64x128xf32, #tpu.memory_space<vmem>>, %arg13: memref<64x128xf32, #tpu.memory_space<vmem>>) attributes {dimension_semantics = [], scalar_prefetch = 0 : i64, scratch_operands = 2 : i64, tpu.core_type = #tpu.core_type<tc>} {
    %c0 = arith.constant 0 : index
    %c0_0 = arith.constant 0 : index
    %0 = vector.load %arg0[%c0, %c0_0] : memref<64x32xbf16, #tpu.memory_space<vmem>>, vector<64x32xbf16>
    %c0_1 = arith.constant 0 : index
    %c0_2 = arith.constant 0 : index
    %1 = vector.load %arg3[%c0_1, %c0_2] : memref<32x128xbf16, #tpu.memory_space<vmem>>, vector<32x128xbf16>
    %cst = arith.constant dense<0.000000e+00> : vector<64x128xf32>
    %2 = tpu.matmul %0, %1, %cst {dimension_numbers = #tpu.dot_dimension_numbers<[1], [0], [0], [1], [0, 0, 1, 1], [], []>} : vector<64x32xbf16>, vector<32x128xbf16>, vector<64x128xf32> -> vector<64x128xf32>
    %c0_3 = arith.constant 0 : index
    %c0_4 = arith.constant 0 : index
    %c0_5 = arith.constant 0 : index
    %3 = vector.load %arg6[%c0_3, %c0_4, %c0_5] : memref<2x1x128xf32, #tpu.memory_space<vmem>>, vector<1x1x128xf32>
    %4 = vector.shape_cast %3 : vector<1x1x128xf32> to vector<1x128xf32>
    %5 = vector.broadcast %4 : vector<1x128xf32> to vector<64x128xf32>
    %6 = arith.addf %2, %5 : vector<64x128xf32>
    %c0_6 = arith.constant 0 : index
    %c0_7 = arith.constant 0 : index
    %7 = vector.load %arg13[%c0_6, %c0_7] : memref<64x128xf32, #tpu.memory_space<vmem>>, vector<64x128xf32>
    tpu.vector_store %arg13[%c0_6, %c0_7], %6 {strides = array<i32>} : memref<64x128xf32, #tpu.memory_space<vmem>>, vector<64x128xf32>,
    %c0_8 = arith.constant 0 : index
    %c0_9 = arith.constant 0 : index
    %c0_10 = arith.constant 0 : index
    %8 = vector.load %arg5[%c0_8, %c0_9, %c0_10] : memref<2x128x128xbf16, #tpu.memory_space<vmem>>, vector<1x128x128xbf16>
    %9 = vector.shape_cast %8 : vector<1x128x128xbf16> to vector<128x128xbf16>
    %c0_11 = arith.constant 0 : index
    %c0_12 = arith.constant 0 : index
    %c0_13 = arith.constant 0 : index
    %10 = vector.load %arg1[%c0_11, %c0_12, %c0_13] : memref<2x8x128xf32, #tpu.memory_space<vmem>>, vector<1x8x128xf32>
    %11 = vector.shape_cast %10 : vector<1x8x128xf32> to vector<8x128xf32>
    %c0_14 = arith.constant 0 : index
    %c0_15 = arith.constant 0 : index
    %c0_16 = arith.constant 0 : index
    %12 = vector.load %arg2[%c0_14, %c0_15, %c0_16] : memref<2x8x128xf32, #tpu.memory_space<vmem>>, vector<1x8x128xf32>
    %13 = vector.shape_cast %12 : vector<1x8x128xf32> to vector<8x128xf32>
    %c0_i32 = arith.constant 0 : i32
    %c8_i32 = arith.constant 8 : i32
    %14 = arith.muli %c0_i32, %c8_i32 : i32
    %15 = tpu.assume_multiple %14, 8 : i32
    %16 = arith.index_cast %15 : i32 to index
    %c0_17 = arith.constant 0 : index
    %17 = vector.load %arg13[%16, %c0_17] : memref<64x128xf32, #tpu.memory_space<vmem>>, vector<8x128xf32>
    %18 = arith.truncf %11 : vector<8x128xf32> to vector<8x128xbf16>
    %cst_18 = arith.constant dense<0.000000e+00> : vector<8x128xf32>
    %19 = tpu.matmul %18, %9, %cst_18 {dimension_numbers = #tpu.dot_dimension_numbers<[1], [0], [0], [1], [0, 0, 1, 1], [], []>} : vector<8x128xbf16>, vector<128x128xbf16>, vector<8x128xf32> -> vector<8x128xf32>
    %20 = arith.addf %17, %19 : vector<8x128xf32>
    %21 = arith.negf %20 : vector<8x128xf32>
    %22 = math.exp %21 : vector<8x128xf32>
    %cst_19 = arith.constant 1.000000e+00 : f32
    %23 = vector.broadcast %cst_19 : f32 to vector<8x128xf32>
    %24 = arith.addf %23, %22 : vector<8x128xf32>
    %25 = arith.divf %23, %24 : vector<8x128xf32>
    %26 = math.tanh %20 : vector<8x128xf32>
    %c96_i32 = arith.constant 96 : i32
    %27 = tpu.dynamic_rotate %25 by %c96_i32 dim 1 : vector<8x128xf32>, i32 -> vector<8x128xf32>
    %c64_i32 = arith.constant 64 : i32
    %28 = tpu.dynamic_rotate %26 by %c64_i32 dim 1 : vector<8x128xf32>, i32 -> vector<8x128xf32>
    %c32_i32 = arith.constant 32 : i32
    %29 = tpu.dynamic_rotate %25 by %c32_i32 dim 1 : vector<8x128xf32>, i32 -> vector<8x128xf32>
    %30 = arith.mulf %27, %13 : vector<8x128xf32>
    %31 = arith.mulf %25, %28 : vector<8x128xf32>
    %32 = arith.addf %30, %31 : vector<8x128xf32>
    %33 = math.tanh %32 : vector<8x128xf32>
    %34 = arith.mulf %29, %33 : vector<8x128xf32>
    %35 = arith.index_cast %15 : i32 to index
    %c0_20 = arith.constant 0 : index
    %36 = vector.load %arg12[%35, %c0_20] : memref<64x128xf32, #tpu.memory_space<vmem>>, vector<8x128xf32>
    tpu.vector_store %arg12[%35, %c0_20], %34 {strides = array<i32>} : memref<64x128xf32, #tpu.memory_space<vmem>>, vector<8x128xf32>,
    %c1_i32 = arith.constant 1 : i32
    %c8_i32_21 = arith.constant 8 : i32
    %37 = arith.muli %c1_i32, %c8_i32_21 : i32
    %38 = tpu.assume_multiple %37, 8 : i32
    %39 = arith.index_cast %38 : i32 to index
    %c0_22 = arith.constant 0 : index
    %40 = vector.load %arg13[%39, %c0_22] : memref<64x128xf32, #tpu.memory_space<vmem>>, vector<8x128xf32>
    %41 = arith.truncf %34 : vector<8x128xf32> to vector<8x128xbf16>
    %cst_23 = arith.constant dense<0.000000e+00> : vector<8x128xf32>
    %42 = tpu.matmul %41, %9, %cst_23 {dimension_numbers = #tpu.dot_dimension_numbers<[1], [0], [0], [1], [0, 0, 1, 1], [], []>} : vector<8x128xbf16>, vector<128x128xbf16>, vector<8x128xf32> -> vector<8x128xf32>
    %43 = arith.addf %40, %42 : vector<8x128xf32>
    %44 = arith.negf %43 : vector<8x128xf32>
    %45 = math.exp %44 : vector<8x128xf32>
    %cst_24 = arith.constant 1.000000e+00 : f32
    %46 = vector.broadcast %cst_24 : f32 to vector<8x128xf32>
    %47 = arith.addf %46, %45 : vector<8x128xf32>
    %48 = arith.divf %46, %47 : vector<8x128xf32>
    %49 = math.tanh %43 : vector<8x128xf32>
    %c96_i32_25 = arith.constant 96 : i32
    %50 = tpu.dynamic_rotate %48 by %c96_i32_25 dim 1 : vector<8x128xf32>, i32 -> vector<8x128xf32>
    %c64_i32_26 = arith.constant 64 : i32
    %51 = tpu.dynamic_rotate %49 by %c64_i32_26 dim 1 : vector<8x128xf32>, i32 -> vector<8x128xf32>
    %c32_i32_27 = arith.constant 32 : i32
    %52 = tpu.dynamic_rotate %48 by %c32_i32_27 dim 1 : vector<8x128xf32>, i32 -> vector<8x128xf32>
    %53 = arith.mulf %50, %32 : vector<8x128xf32>
    %54 = arith.mulf %48, %51 : vector<8x128xf32>
    %55 = arith.addf %53, %54 : vector<8x128xf32>
    %56 = math.tanh %55 : vector<8x128xf32>
    %57 = arith.mulf %52, %56 : vector<8x128xf32>
    %58 = arith.index_cast %38 : i32 to index
    %c0_28 = arith.constant 0 : index
    %59 = vector.load %arg12[%58, %c0_28] : memref<64x128xf32, #tpu.memory_space<vmem>>, vector<8x128xf32>
    tpu.vector_store %arg12[%58, %c0_28], %57 {strides = array<i32>} : memref<64x128xf32, #tpu.memory_space<vmem>>, vector<8x128xf32>,
    %c2_i32 = arith.constant 2 : i32
    %c8_i32_29 = arith.constant 8 : i32
    %60 = arith.muli %c2_i32, %c8_i32_29 : i32
    %61 = tpu.assume_multiple %60, 8 : i32
    %62 = arith.index_cast %61 : i32 to index
    %c0_30 = arith.constant 0 : index
    %63 = vector.load %arg13[%62, %c0_30] : memref<64x128xf32, #tpu.memory_space<vmem>>, vector<8x128xf32>
    %64 = arith.truncf %57 : vector<8x128xf32> to vector<8x128xbf16>
    %cst_31 = arith.constant dense<0.000000e+00> : vector<8x128xf32>
    %65 = tpu.matmul %64, %9, %cst_31 {dimension_numbers = #tpu.dot_dimension_numbers<[1], [0], [0], [1], [0, 0, 1, 1], [], []>} : vector<8x128xbf16>, vector<128x128xbf16>, vector<8x128xf32> -> vector<8x128xf32>
    %66 = arith.addf %63, %65 : vector<8x128xf32>
    %67 = arith.negf %66 : vector<8x128xf32>
    %68 = math.exp %67 : vector<8x128xf32>
    %cst_32 = arith.constant 1.000000e+00 : f32
    %69 = vector.broadcast %cst_32 : f32 to vector<8x128xf32>
    %70 = arith.addf %69, %68 : vector<8x128xf32>
    %71 = arith.divf %69, %70 : vector<8x128xf32>
    %72 = math.tanh %66 : vector<8x128xf32>
    %c96_i32_33 = arith.constant 96 : i32
    %73 = tpu.dynamic_rotate %71 by %c96_i32_33 dim 1 : vector<8x128xf32>, i32 -> vector<8x128xf32>
    %c64_i32_34 = arith.constant 64 : i32
    %74 = tpu.dynamic_rotate %72 by %c64_i32_34 dim 1 : vector<8x128xf32>, i32 -> vector<8x128xf32>
    %c32_i32_35 = arith.constant 32 : i32
    %75 = tpu.dynamic_rotate %71 by %c32_i32_35 dim 1 : vector<8x128xf32>, i32 -> vector<8x128xf32>
    %76 = arith.mulf %73, %55 : vector<8x128xf32>
    %77 = arith.mulf %71, %74 : vector<8x128xf32>
    %78 = arith.addf %76, %77 : vector<8x128xf32>
    %79 = math.tanh %78 : vector<8x128xf32>
    %80 = arith.mulf %75, %79 : vector<8x128xf32>
    %81 = arith.index_cast %61 : i32 to index
    %c0_36 = arith.constant 0 : index
    %82 = vector.load %arg12[%81, %c0_36] : memref<64x128xf32, #tpu.memory_space<vmem>>, vector<8x128xf32>
    tpu.vector_store %arg12[%81, %c0_36], %80 {strides = array<i32>} : memref<64x128xf32, #tpu.memory_space<vmem>>, vector<8x128xf32>,
    %c3_i32 = arith.constant 3 : i32
    %c8_i32_37 = arith.constant 8 : i32
    %83 = arith.muli %c3_i32, %c8_i32_37 : i32
    %84 = tpu.assume_multiple %83, 8 : i32
    %85 = arith.index_cast %84 : i32 to index
    %c0_38 = arith.constant 0 : index
    %86 = vector.load %arg13[%85, %c0_38] : memref<64x128xf32, #tpu.memory_space<vmem>>, vector<8x128xf32>
    %87 = arith.truncf %80 : vector<8x128xf32> to vector<8x128xbf16>
    %cst_39 = arith.constant dense<0.000000e+00> : vector<8x128xf32>
    %88 = tpu.matmul %87, %9, %cst_39 {dimension_numbers = #tpu.dot_dimension_numbers<[1], [0], [0], [1], [0, 0, 1, 1], [], []>} : vector<8x128xbf16>, vector<128x128xbf16>, vector<8x128xf32> -> vector<8x128xf32>
    %89 = arith.addf %86, %88 : vector<8x128xf32>
    %90 = arith.negf %89 : vector<8x128xf32>
    %91 = math.exp %90 : vector<8x128xf32>
    %cst_40 = arith.constant 1.000000e+00 : f32
    %92 = vector.broadcast %cst_40 : f32 to vector<8x128xf32>
    %93 = arith.addf %92, %91 : vector<8x128xf32>
    %94 = arith.divf %92, %93 : vector<8x128xf32>
    %95 = math.tanh %89 : vector<8x128xf32>
    %c96_i32_41 = arith.constant 96 : i32
    %96 = tpu.dynamic_rotate %94 by %c96_i32_41 dim 1 : vector<8x128xf32>, i32 -> vector<8x128xf32>
    %c64_i32_42 = arith.constant 64 : i32
    %97 = tpu.dynamic_rotate %95 by %c64_i32_42 dim 1 : vector<8x128xf32>, i32 -> vector<8x128xf32>
    %c32_i32_43 = arith.constant 32 : i32
    %98 = tpu.dynamic_rotate %94 by %c32_i32_43 dim 1 : vector<8x128xf32>, i32 -> vector<8x128xf32>
    %99 = arith.mulf %96, %78 : vector<8x128xf32>
    %100 = arith.mulf %94, %97 : vector<8x128xf32>
    %101 = arith.addf %99, %100 : vector<8x128xf32>
    %102 = math.tanh %101 : vector<8x128xf32>
    %103 = arith.mulf %98, %102 : vector<8x128xf32>
    %104 = arith.index_cast %84 : i32 to index
    %c0_44 = arith.constant 0 : index
    %105 = vector.load %arg12[%104, %c0_44] : memref<64x128xf32, #tpu.memory_space<vmem>>, vector<8x128xf32>
    tpu.vector_store %arg12[%104, %c0_44], %103 {strides = array<i32>} : memref<64x128xf32, #tpu.memory_space<vmem>>, vector<8x128xf32>,
    %c4_i32 = arith.constant 4 : i32
    %c8_i32_45 = arith.constant 8 : i32
    %106 = arith.muli %c4_i32, %c8_i32_45 : i32
    %107 = tpu.assume_multiple %106, 8 : i32
    %108 = arith.index_cast %107 : i32 to index
    %c0_46 = arith.constant 0 : index
    %109 = vector.load %arg13[%108, %c0_46] : memref<64x128xf32, #tpu.memory_space<vmem>>, vector<8x128xf32>
    %110 = arith.truncf %103 : vector<8x128xf32> to vector<8x128xbf16>
    %cst_47 = arith.constant dense<0.000000e+00> : vector<8x128xf32>
    %111 = tpu.matmul %110, %9, %cst_47 {dimension_numbers = #tpu.dot_dimension_numbers<[1], [0], [0], [1], [0, 0, 1, 1], [], []>} : vector<8x128xbf16>, vector<128x128xbf16>, vector<8x128xf32> -> vector<8x128xf32>
    %112 = arith.addf %109, %111 : vector<8x128xf32>
    %113 = arith.negf %112 : vector<8x128xf32>
    %114 = math.exp %113 : vector<8x128xf32>
    %cst_48 = arith.constant 1.000000e+00 : f32
    %115 = vector.broadcast %cst_48 : f32 to vector<8x128xf32>
    %116 = arith.addf %115, %114 : vector<8x128xf32>
    %117 = arith.divf %115, %116 : vector<8x128xf32>
    %118 = math.tanh %112 : vector<8x128xf32>
    %c96_i32_49 = arith.constant 96 : i32
    %119 = tpu.dynamic_rotate %117 by %c96_i32_49 dim 1 : vector<8x128xf32>, i32 -> vector<8x128xf32>
    %c64_i32_50 = arith.constant 64 : i32
    %120 = tpu.dynamic_rotate %118 by %c64_i32_50 dim 1 : vector<8x128xf32>, i32 -> vector<8x128xf32>
    %c32_i32_51 = arith.constant 32 : i32
    %121 = tpu.dynamic_rotate %117 by %c32_i32_51 dim 1 : vector<8x128xf32>, i32 -> vector<8x128xf32>
    %122 = arith.mulf %119, %101 : vector<8x128xf32>
    %123 = arith.mulf %117, %120 : vector<8x128xf32>
    %124 = arith.addf %122, %123 : vector<8x128xf32>
    %125 = math.tanh %124 : vector<8x128xf32>
    %126 = arith.mulf %121, %125 : vector<8x128xf32>
    %127 = arith.index_cast %107 : i32 to index
    %c0_52 = arith.constant 0 : index
    %128 = vector.load %arg12[%127, %c0_52] : memref<64x128xf32, #tpu.memory_space<vmem>>, vector<8x128xf32>
    tpu.vector_store %arg12[%127, %c0_52], %126 {strides = array<i32>} : memref<64x128xf32, #tpu.memory_space<vmem>>, vector<8x128xf32>,
    %c5_i32 = arith.constant 5 : i32
    %c8_i32_53 = arith.constant 8 : i32
    %129 = arith.muli %c5_i32, %c8_i32_53 : i32
    %130 = tpu.assume_multiple %129, 8 : i32
    %131 = arith.index_cast %130 : i32 to index
    %c0_54 = arith.constant 0 : index
    %132 = vector.load %arg13[%131, %c0_54] : memref<64x128xf32, #tpu.memory_space<vmem>>, vector<8x128xf32>
    %133 = arith.truncf %126 : vector<8x128xf32> to vector<8x128xbf16>
    %cst_55 = arith.constant dense<0.000000e+00> : vector<8x128xf32>
    %134 = tpu.matmul %133, %9, %cst_55 {dimension_numbers = #tpu.dot_dimension_numbers<[1], [0], [0], [1], [0, 0, 1, 1], [], []>} : vector<8x128xbf16>, vector<128x128xbf16>, vector<8x128xf32> -> vector<8x128xf32>
    %135 = arith.addf %132, %134 : vector<8x128xf32>
    %136 = arith.negf %135 : vector<8x128xf32>
    %137 = math.exp %136 : vector<8x128xf32>
    %cst_56 = arith.constant 1.000000e+00 : f32
    %138 = vector.broadcast %cst_56 : f32 to vector<8x128xf32>
    %139 = arith.addf %138, %137 : vector<8x128xf32>
    %140 = arith.divf %138, %139 : vector<8x128xf32>
    %141 = math.tanh %135 : vector<8x128xf32>
    %c96_i32_57 = arith.constant 96 : i32
    %142 = tpu.dynamic_rotate %140 by %c96_i32_57 dim 1 : vector<8x128xf32>, i32 -> vector<8x128xf32>
    %c64_i32_58 = arith.constant 64 : i32
    %143 = tpu.dynamic_rotate %141 by %c64_i32_58 dim 1 : vector<8x128xf32>, i32 -> vector<8x128xf32>
    %c32_i32_59 = arith.constant 32 : i32
    %144 = tpu.dynamic_rotate %140 by %c32_i32_59 dim 1 : vector<8x128xf32>, i32 -> vector<8x128xf32>
    %145 = arith.mulf %142, %124 : vector<8x128xf32>
    %146 = arith.mulf %140, %143 : vector<8x128xf32>
    %147 = arith.addf %145, %146 : vector<8x128xf32>
    %148 = math.tanh %147 : vector<8x128xf32>
    %149 = arith.mulf %144, %148 : vector<8x128xf32>
    %150 = arith.index_cast %130 : i32 to index
    %c0_60 = arith.constant 0 : index
    %151 = vector.load %arg12[%150, %c0_60] : memref<64x128xf32, #tpu.memory_space<vmem>>, vector<8x128xf32>
    tpu.vector_store %arg12[%150, %c0_60], %149 {strides = array<i32>} : memref<64x128xf32, #tpu.memory_space<vmem>>, vector<8x128xf32>,
    %c6_i32 = arith.constant 6 : i32
    %c8_i32_61 = arith.constant 8 : i32
    %152 = arith.muli %c6_i32, %c8_i32_61 : i32
    %153 = tpu.assume_multiple %152, 8 : i32
    %154 = arith.index_cast %153 : i32 to index
    %c0_62 = arith.constant 0 : index
    %155 = vector.load %arg13[%154, %c0_62] : memref<64x128xf32, #tpu.memory_space<vmem>>, vector<8x128xf32>
    %156 = arith.truncf %149 : vector<8x128xf32> to vector<8x128xbf16>
    %cst_63 = arith.constant dense<0.000000e+00> : vector<8x128xf32>
    %157 = tpu.matmul %156, %9, %cst_63 {dimension_numbers = #tpu.dot_dimension_numbers<[1], [0], [0], [1], [0, 0, 1, 1], [], []>} : vector<8x128xbf16>, vector<128x128xbf16>, vector<8x128xf32> -> vector<8x128xf32>
    %158 = arith.addf %155, %157 : vector<8x128xf32>
    %159 = arith.negf %158 : vector<8x128xf32>
    %160 = math.exp %159 : vector<8x128xf32>
    %cst_64 = arith.constant 1.000000e+00 : f32
    %161 = vector.broadcast %cst_64 : f32 to vector<8x128xf32>
    %162 = arith.addf %161, %160 : vector<8x128xf32>
    %163 = arith.divf %161, %162 : vector<8x128xf32>
    %164 = math.tanh %158 : vector<8x128xf32>
    %c96_i32_65 = arith.constant 96 : i32
    %165 = tpu.dynamic_rotate %163 by %c96_i32_65 dim 1 : vector<8x128xf32>, i32 -> vector<8x128xf32>
    %c64_i32_66 = arith.constant 64 : i32
    %166 = tpu.dynamic_rotate %164 by %c64_i32_66 dim 1 : vector<8x128xf32>, i32 -> vector<8x128xf32>
    %c32_i32_67 = arith.constant 32 : i32
    %167 = tpu.dynamic_rotate %163 by %c32_i32_67 dim 1 : vector<8x128xf32>, i32 -> vector<8x128xf32>
    %168 = arith.mulf %165, %147 : vector<8x128xf32>
    %169 = arith.mulf %163, %166 : vector<8x128xf32>
    %170 = arith.addf %168, %169 : vector<8x128xf32>
    %171 = math.tanh %170 : vector<8x128xf32>
    %172 = arith.mulf %167, %171 : vector<8x128xf32>
    %173 = arith.index_cast %153 : i32 to index
    %c0_68 = arith.constant 0 : index
    %174 = vector.load %arg12[%173, %c0_68] : memref<64x128xf32, #tpu.memory_space<vmem>>, vector<8x128xf32>
    tpu.vector_store %arg12[%173, %c0_68], %172 {strides = array<i32>} : memref<64x128xf32, #tpu.memory_space<vmem>>, vector<8x128xf32>,
    %c7_i32 = arith.constant 7 : i32
    %c8_i32_69 = arith.constant 8 : i32
    %175 = arith.muli %c7_i32, %c8_i32_69 : i32
    %176 = tpu.assume_multiple %175, 8 : i32
    %177 = arith.index_cast %176 : i32 to index
    %c0_70 = arith.constant 0 : index
    %178 = vector.load %arg13[%177, %c0_70] : memref<64x128xf32, #tpu.memory_space<vmem>>, vector<8x128xf32>
    %179 = arith.truncf %172 : vector<8x128xf32> to vector<8x128xbf16>
    %cst_71 = arith.constant dense<0.000000e+00> : vector<8x128xf32>
    %180 = tpu.matmul %179, %9, %cst_71 {dimension_numbers = #tpu.dot_dimension_numbers<[1], [0], [0], [1], [0, 0, 1, 1], [], []>} : vector<8x128xbf16>, vector<128x128xbf16>, vector<8x128xf32> -> vector<8x128xf32>
    %181 = arith.addf %178, %180 : vector<8x128xf32>
    %182 = arith.negf %181 : vector<8x128xf32>
    %183 = math.exp %182 : vector<8x128xf32>
    %cst_72 = arith.constant 1.000000e+00 : f32
    %184 = vector.broadcast %cst_72 : f32 to vector<8x128xf32>
    %185 = arith.addf %184, %183 : vector<8x128xf32>
    %186 = arith.divf %184, %185 : vector<8x128xf32>
    %187 = math.tanh %181 : vector<8x128xf32>
    %c96_i32_73 = arith.constant 96 : i32
    %188 = tpu.dynamic_rotate %186 by %c96_i32_73 dim 1 : vector<8x128xf32>, i32 -> vector<8x128xf32>
    %c64_i32_74 = arith.constant 64 : i32
    %189 = tpu.dynamic_rotate %187 by %c64_i32_74 dim 1 : vector<8x128xf32>, i32 -> vector<8x128xf32>
    %c32_i32_75 = arith.constant 32 : i32
    %190 = tpu.dynamic_rotate %186 by %c32_i32_75 dim 1 : vector<8x128xf32>, i32 -> vector<8x128xf32>
    %191 = arith.mulf %188, %170 : vector<8x128xf32>
    %192 = arith.mulf %186, %189 : vector<8x128xf32>
    %193 = arith.addf %191, %192 : vector<8x128xf32>
    %194 = math.tanh %193 : vector<8x128xf32>
    %195 = arith.mulf %190, %194 : vector<8x128xf32>
    %196 = arith.index_cast %176 : i32 to index
    %c0_76 = arith.constant 0 : index
    %197 = vector.load %arg12[%196, %c0_76] : memref<64x128xf32, #tpu.memory_space<vmem>>, vector<8x128xf32>
    tpu.vector_store %arg12[%196, %c0_76], %195 {strides = array<i32>} : memref<64x128xf32, #tpu.memory_space<vmem>>, vector<8x128xf32>,
    %c8_i32_77 = arith.constant 8 : i32
    %c0_78 = arith.constant 0 : index
    %c0_79 = arith.constant 0 : index
    %c0_80 = arith.constant 0 : index
    %198 = vector.load %arg10[%c0_78, %c0_79, %c0_80] : memref<2x8x128xf32, #tpu.memory_space<vmem>>, vector<1x8x128xf32>
    %199 = vector.shape_cast %198 : vector<1x8x128xf32> to vector<8x128xf32>
    %200 = vector.shape_cast %195 : vector<8x128xf32> to vector<1x8x128xf32>
    tpu.vector_store %arg10[%c0_78, %c0_79, %c0_80], %200 {strides = array<i32>} : memref<2x8x128xf32, #tpu.memory_space<vmem>>, vector<1x8x128xf32>,
    %c0_81 = arith.constant 0 : index
    %c0_82 = arith.constant 0 : index
    %c0_83 = arith.constant 0 : index
    %201 = vector.load %arg11[%c0_81, %c0_82, %c0_83] : memref<2x8x128xf32, #tpu.memory_space<vmem>>, vector<1x8x128xf32>
    %202 = vector.shape_cast %201 : vector<1x8x128xf32> to vector<8x128xf32>
    %203 = vector.shape_cast %193 : vector<8x128xf32> to vector<1x8x128xf32>
    tpu.vector_store %arg11[%c0_81, %c0_82, %c0_83], %203 {strides = array<i32>} : memref<2x8x128xf32, #tpu.memory_space<vmem>>, vector<1x8x128xf32>,
    %c0_84 = arith.constant 0 : index
    %c0_85 = arith.constant 0 : index
    %204 = vector.load %arg12[%c0_84, %c0_85] : memref<64x128xf32, #tpu.memory_space<vmem>>, vector<64x128xf32>
    %205 = arith.truncf %204 : vector<64x128xf32> to vector<64x128xbf16>
    %c0_86 = arith.constant 0 : index
    %c0_87 = arith.constant 0 : index
    %c0_88 = arith.constant 0 : index
    %206 = vector.load %arg4[%c0_86, %c0_87, %c0_88] : memref<1x128x128xbf16, #tpu.memory_space<vmem>>, vector<1x128x128xbf16>
    %207 = vector.shape_cast %206 : vector<1x128x128xbf16> to vector<128x128xbf16>
    %cst_89 = arith.constant dense<0.000000e+00> : vector<64x128xf32>
    %208 = tpu.matmul %205, %207, %cst_89 {dimension_numbers = #tpu.dot_dimension_numbers<[1], [0], [0], [1], [0, 0, 1, 1], [], []>} : vector<64x128xbf16>, vector<128x128xbf16>, vector<64x128xf32> -> vector<64x128xf32>
    %c1 = arith.constant 1 : index
    %c0_90 = arith.constant 0 : index
    %c0_91 = arith.constant 0 : index
    %209 = vector.load %arg6[%c1, %c0_90, %c0_91] : memref<2x1x128xf32, #tpu.memory_space<vmem>>, vector<1x1x128xf32>
    %210 = vector.shape_cast %209 : vector<1x1x128xf32> to vector<1x128xf32>
    %211 = vector.broadcast %210 : vector<1x128xf32> to vector<64x128xf32>
    %212 = arith.addf %208, %211 : vector<64x128xf32>
    %c0_92 = arith.constant 0 : index
    %c0_93 = arith.constant 0 : index
    %213 = vector.load %arg13[%c0_92, %c0_93] : memref<64x128xf32, #tpu.memory_space<vmem>>, vector<64x128xf32>
    tpu.vector_store %arg13[%c0_92, %c0_93], %212 {strides = array<i32>} : memref<64x128xf32, #tpu.memory_space<vmem>>, vector<64x128xf32>,
    %c1_94 = arith.constant 1 : index
    %c0_95 = arith.constant 0 : index
    %c0_96 = arith.constant 0 : index
    %214 = vector.load %arg5[%c1_94, %c0_95, %c0_96] : memref<2x128x128xbf16, #tpu.memory_space<vmem>>, vector<1x128x128xbf16>
    %215 = vector.shape_cast %214 : vector<1x128x128xbf16> to vector<128x128xbf16>
    %c1_97 = arith.constant 1 : index
    %c0_98 = arith.constant 0 : index
    %c0_99 = arith.constant 0 : index
    %216 = vector.load %arg1[%c1_97, %c0_98, %c0_99] : memref<2x8x128xf32, #tpu.memory_space<vmem>>, vector<1x8x128xf32>
    %217 = vector.shape_cast %216 : vector<1x8x128xf32> to vector<8x128xf32>
    %c1_100 = arith.constant 1 : index
    %c0_101 = arith.constant 0 : index
    %c0_102 = arith.constant 0 : index
    %218 = vector.load %arg2[%c1_100, %c0_101, %c0_102] : memref<2x8x128xf32, #tpu.memory_space<vmem>>, vector<1x8x128xf32>
    %219 = vector.shape_cast %218 : vector<1x8x128xf32> to vector<8x128xf32>
    %c0_i32_103 = arith.constant 0 : i32
    %c8_i32_104 = arith.constant 8 : i32
    %220 = arith.muli %c0_i32_103, %c8_i32_104 : i32
    %221 = tpu.assume_multiple %220, 8 : i32
    %222 = arith.index_cast %221 : i32 to index
    %c0_105 = arith.constant 0 : index
    %223 = vector.load %arg13[%222, %c0_105] : memref<64x128xf32, #tpu.memory_space<vmem>>, vector<8x128xf32>
    %224 = arith.truncf %217 : vector<8x128xf32> to vector<8x128xbf16>
    %cst_106 = arith.constant dense<0.000000e+00> : vector<8x128xf32>
    %225 = tpu.matmul %224, %215, %cst_106 {dimension_numbers = #tpu.dot_dimension_numbers<[1], [0], [0], [1], [0, 0, 1, 1], [], []>} : vector<8x128xbf16>, vector<128x128xbf16>, vector<8x128xf32> -> vector<8x128xf32>
    %226 = arith.addf %223, %225 : vector<8x128xf32>
    %227 = arith.negf %226 : vector<8x128xf32>
    %228 = math.exp %227 : vector<8x128xf32>
    %cst_107 = arith.constant 1.000000e+00 : f32
    %229 = vector.broadcast %cst_107 : f32 to vector<8x128xf32>
    %230 = arith.addf %229, %228 : vector<8x128xf32>
    %231 = arith.divf %229, %230 : vector<8x128xf32>
    %232 = math.tanh %226 : vector<8x128xf32>
    %c96_i32_108 = arith.constant 96 : i32
    %233 = tpu.dynamic_rotate %231 by %c96_i32_108 dim 1 : vector<8x128xf32>, i32 -> vector<8x128xf32>
    %c64_i32_109 = arith.constant 64 : i32
    %234 = tpu.dynamic_rotate %232 by %c64_i32_109 dim 1 : vector<8x128xf32>, i32 -> vector<8x128xf32>
    %c32_i32_110 = arith.constant 32 : i32
    %235 = tpu.dynamic_rotate %231 by %c32_i32_110 dim 1 : vector<8x128xf32>, i32 -> vector<8x128xf32>
    %236 = arith.mulf %233, %219 : vector<8x128xf32>
    %237 = arith.mulf %231, %234 : vector<8x128xf32>
    %238 = arith.addf %236, %237 : vector<8x128xf32>
    %239 = math.tanh %238 : vector<8x128xf32>
    %240 = arith.mulf %235, %239 : vector<8x128xf32>
    %c1_i32_111 = arith.constant 1 : i32
    %c8_i32_112 = arith.constant 8 : i32
    %241 = arith.muli %c1_i32_111, %c8_i32_112 : i32
    %242 = tpu.assume_multiple %241, 8 : i32
    %243 = arith.index_cast %242 : i32 to index
    %c0_113 = arith.constant 0 : index
    %244 = vector.load %arg13[%243, %c0_113] : memref<64x128xf32, #tpu.memory_space<vmem>>, vector<8x128xf32>
    %245 = arith.truncf %240 : vector<8x128xf32> to vector<8x128xbf16>
    %cst_114 = arith.constant dense<0.000000e+00> : vector<8x128xf32>
    %246 = tpu.matmul %245, %215, %cst_114 {dimension_numbers = #tpu.dot_dimension_numbers<[1], [0], [0], [1], [0, 0, 1, 1], [], []>} : vector<8x128xbf16>, vector<128x128xbf16>, vector<8x128xf32> -> vector<8x128xf32>
    %247 = arith.addf %244, %246 : vector<8x128xf32>
    %248 = arith.negf %247 : vector<8x128xf32>
    %249 = math.exp %248 : vector<8x128xf32>
    %cst_115 = arith.constant 1.000000e+00 : f32
    %250 = vector.broadcast %cst_115 : f32 to vector<8x128xf32>
    %251 = arith.addf %250, %249 : vector<8x128xf32>
    %252 = arith.divf %250, %251 : vector<8x128xf32>
    %253 = math.tanh %247 : vector<8x128xf32>
    %c96_i32_116 = arith.constant 96 : i32
    %254 = tpu.dynamic_rotate %252 by %c96_i32_116 dim 1 : vector<8x128xf32>, i32 -> vector<8x128xf32>
    %c64_i32_117 = arith.constant 64 : i32
    %255 = tpu.dynamic_rotate %253 by %c64_i32_117 dim 1 : vector<8x128xf32>, i32 -> vector<8x128xf32>
    %c32_i32_118 = arith.constant 32 : i32
    %256 = tpu.dynamic_rotate %252 by %c32_i32_118 dim 1 : vector<8x128xf32>, i32 -> vector<8x128xf32>
    %257 = arith.mulf %254, %238 : vector<8x128xf32>
    %258 = arith.mulf %252, %255 : vector<8x128xf32>
    %259 = arith.addf %257, %258 : vector<8x128xf32>
    %260 = math.tanh %259 : vector<8x128xf32>
    %261 = arith.mulf %256, %260 : vector<8x128xf32>
    %c2_i32_119 = arith.constant 2 : i32
    %c8_i32_120 = arith.constant 8 : i32
    %262 = arith.muli %c2_i32_119, %c8_i32_120 : i32
    %263 = tpu.assume_multiple %262, 8 : i32
    %264 = arith.index_cast %263 : i32 to index
    %c0_121 = arith.constant 0 : index
    %265 = vector.load %arg13[%264, %c0_121] : memref<64x128xf32, #tpu.memory_space<vmem>>, vector<8x128xf32>
    %266 = arith.truncf %261 : vector<8x128xf32> to vector<8x128xbf16>
    %cst_122 = arith.constant dense<0.000000e+00> : vector<8x128xf32>
    %267 = tpu.matmul %266, %215, %cst_122 {dimension_numbers = #tpu.dot_dimension_numbers<[1], [0], [0], [1], [0, 0, 1, 1], [], []>} : vector<8x128xbf16>, vector<128x128xbf16>, vector<8x128xf32> -> vector<8x128xf32>
    %268 = arith.addf %265, %267 : vector<8x128xf32>
    %269 = arith.negf %268 : vector<8x128xf32>
    %270 = math.exp %269 : vector<8x128xf32>
    %cst_123 = arith.constant 1.000000e+00 : f32
    %271 = vector.broadcast %cst_123 : f32 to vector<8x128xf32>
    %272 = arith.addf %271, %270 : vector<8x128xf32>
    %273 = arith.divf %271, %272 : vector<8x128xf32>
    %274 = math.tanh %268 : vector<8x128xf32>
    %c96_i32_124 = arith.constant 96 : i32
    %275 = tpu.dynamic_rotate %273 by %c96_i32_124 dim 1 : vector<8x128xf32>, i32 -> vector<8x128xf32>
    %c64_i32_125 = arith.constant 64 : i32
    %276 = tpu.dynamic_rotate %274 by %c64_i32_125 dim 1 : vector<8x128xf32>, i32 -> vector<8x128xf32>
    %c32_i32_126 = arith.constant 32 : i32
    %277 = tpu.dynamic_rotate %273 by %c32_i32_126 dim 1 : vector<8x128xf32>, i32 -> vector<8x128xf32>
    %278 = arith.mulf %275, %259 : vector<8x128xf32>
    %279 = arith.mulf %273, %276 : vector<8x128xf32>
    %280 = arith.addf %278, %279 : vector<8x128xf32>
    %281 = math.tanh %280 : vector<8x128xf32>
    %282 = arith.mulf %277, %281 : vector<8x128xf32>
    %c3_i32_127 = arith.constant 3 : i32
    %c8_i32_128 = arith.constant 8 : i32
    %283 = arith.muli %c3_i32_127, %c8_i32_128 : i32
    %284 = tpu.assume_multiple %283, 8 : i32
    %285 = arith.index_cast %284 : i32 to index
    %c0_129 = arith.constant 0 : index
    %286 = vector.load %arg13[%285, %c0_129] : memref<64x128xf32, #tpu.memory_space<vmem>>, vector<8x128xf32>
    %287 = arith.truncf %282 : vector<8x128xf32> to vector<8x128xbf16>
    %cst_130 = arith.constant dense<0.000000e+00> : vector<8x128xf32>
    %288 = tpu.matmul %287, %215, %cst_130 {dimension_numbers = #tpu.dot_dimension_numbers<[1], [0], [0], [1], [0, 0, 1, 1], [], []>} : vector<8x128xbf16>, vector<128x128xbf16>, vector<8x128xf32> -> vector<8x128xf32>
    %289 = arith.addf %286, %288 : vector<8x128xf32>
    %290 = arith.negf %289 : vector<8x128xf32>
    %291 = math.exp %290 : vector<8x128xf32>
    %cst_131 = arith.constant 1.000000e+00 : f32
    %292 = vector.broadcast %cst_131 : f32 to vector<8x128xf32>
    %293 = arith.addf %292, %291 : vector<8x128xf32>
    %294 = arith.divf %292, %293 : vector<8x128xf32>
    %295 = math.tanh %289 : vector<8x128xf32>
    %c96_i32_132 = arith.constant 96 : i32
    %296 = tpu.dynamic_rotate %294 by %c96_i32_132 dim 1 : vector<8x128xf32>, i32 -> vector<8x128xf32>
    %c64_i32_133 = arith.constant 64 : i32
    %297 = tpu.dynamic_rotate %295 by %c64_i32_133 dim 1 : vector<8x128xf32>, i32 -> vector<8x128xf32>
    %c32_i32_134 = arith.constant 32 : i32
    %298 = tpu.dynamic_rotate %294 by %c32_i32_134 dim 1 : vector<8x128xf32>, i32 -> vector<8x128xf32>
    %299 = arith.mulf %296, %280 : vector<8x128xf32>
    %300 = arith.mulf %294, %297 : vector<8x128xf32>
    %301 = arith.addf %299, %300 : vector<8x128xf32>
    %302 = math.tanh %301 : vector<8x128xf32>
    %303 = arith.mulf %298, %302 : vector<8x128xf32>
    %c4_i32_135 = arith.constant 4 : i32
    %c8_i32_136 = arith.constant 8 : i32
    %304 = arith.muli %c4_i32_135, %c8_i32_136 : i32
    %305 = tpu.assume_multiple %304, 8 : i32
    %306 = arith.index_cast %305 : i32 to index
    %c0_137 = arith.constant 0 : index
    %307 = vector.load %arg13[%306, %c0_137] : memref<64x128xf32, #tpu.memory_space<vmem>>, vector<8x128xf32>
    %308 = arith.truncf %303 : vector<8x128xf32> to vector<8x128xbf16>
    %cst_138 = arith.constant dense<0.000000e+00> : vector<8x128xf32>
    %309 = tpu.matmul %308, %215, %cst_138 {dimension_numbers = #tpu.dot_dimension_numbers<[1], [0], [0], [1], [0, 0, 1, 1], [], []>} : vector<8x128xbf16>, vector<128x128xbf16>, vector<8x128xf32> -> vector<8x128xf32>
    %310 = arith.addf %307, %309 : vector<8x128xf32>
    %311 = arith.negf %310 : vector<8x128xf32>
    %312 = math.exp %311 : vector<8x128xf32>
    %cst_139 = arith.constant 1.000000e+00 : f32
    %313 = vector.broadcast %cst_139 : f32 to vector<8x128xf32>
    %314 = arith.addf %313, %312 : vector<8x128xf32>
    %315 = arith.divf %313, %314 : vector<8x128xf32>
    %316 = math.tanh %310 : vector<8x128xf32>
    %c96_i32_140 = arith.constant 96 : i32
    %317 = tpu.dynamic_rotate %315 by %c96_i32_140 dim 1 : vector<8x128xf32>, i32 -> vector<8x128xf32>
    %c64_i32_141 = arith.constant 64 : i32
    %318 = tpu.dynamic_rotate %316 by %c64_i32_141 dim 1 : vector<8x128xf32>, i32 -> vector<8x128xf32>
    %c32_i32_142 = arith.constant 32 : i32
    %319 = tpu.dynamic_rotate %315 by %c32_i32_142 dim 1 : vector<8x128xf32>, i32 -> vector<8x128xf32>
    %320 = arith.mulf %317, %301 : vector<8x128xf32>
    %321 = arith.mulf %315, %318 : vector<8x128xf32>
    %322 = arith.addf %320, %321 : vector<8x128xf32>
    %323 = math.tanh %322 : vector<8x128xf32>
    %324 = arith.mulf %319, %323 : vector<8x128xf32>
    %c5_i32_143 = arith.constant 5 : i32
    %c8_i32_144 = arith.constant 8 : i32
    %325 = arith.muli %c5_i32_143, %c8_i32_144 : i32
    %326 = tpu.assume_multiple %325, 8 : i32
    %327 = arith.index_cast %326 : i32 to index
    %c0_145 = arith.constant 0 : index
    %328 = vector.load %arg13[%327, %c0_145] : memref<64x128xf32, #tpu.memory_space<vmem>>, vector<8x128xf32>
    %329 = arith.truncf %324 : vector<8x128xf32> to vector<8x128xbf16>
    %cst_146 = arith.constant dense<0.000000e+00> : vector<8x128xf32>
    %330 = tpu.matmul %329, %215, %cst_146 {dimension_numbers = #tpu.dot_dimension_numbers<[1], [0], [0], [1], [0, 0, 1, 1], [], []>} : vector<8x128xbf16>, vector<128x128xbf16>, vector<8x128xf32> -> vector<8x128xf32>
    %331 = arith.addf %328, %330 : vector<8x128xf32>
    %332 = arith.negf %331 : vector<8x128xf32>
    %333 = math.exp %332 : vector<8x128xf32>
    %cst_147 = arith.constant 1.000000e+00 : f32
    %334 = vector.broadcast %cst_147 : f32 to vector<8x128xf32>
    %335 = arith.addf %334, %333 : vector<8x128xf32>
    %336 = arith.divf %334, %335 : vector<8x128xf32>
    %337 = math.tanh %331 : vector<8x128xf32>
    %c96_i32_148 = arith.constant 96 : i32
    %338 = tpu.dynamic_rotate %336 by %c96_i32_148 dim 1 : vector<8x128xf32>, i32 -> vector<8x128xf32>
    %c64_i32_149 = arith.constant 64 : i32
    %339 = tpu.dynamic_rotate %337 by %c64_i32_149 dim 1 : vector<8x128xf32>, i32 -> vector<8x128xf32>
    %c32_i32_150 = arith.constant 32 : i32
    %340 = tpu.dynamic_rotate %336 by %c32_i32_150 dim 1 : vector<8x128xf32>, i32 -> vector<8x128xf32>
    %341 = arith.mulf %338, %322 : vector<8x128xf32>
    %342 = arith.mulf %336, %339 : vector<8x128xf32>
    %343 = arith.addf %341, %342 : vector<8x128xf32>
    %344 = math.tanh %343 : vector<8x128xf32>
    %345 = arith.mulf %340, %344 : vector<8x128xf32>
    %c6_i32_151 = arith.constant 6 : i32
    %c8_i32_152 = arith.constant 8 : i32
    %346 = arith.muli %c6_i32_151, %c8_i32_152 : i32
    %347 = tpu.assume_multiple %346, 8 : i32
    %348 = arith.index_cast %347 : i32 to index
    %c0_153 = arith.constant 0 : index
    %349 = vector.load %arg13[%348, %c0_153] : memref<64x128xf32, #tpu.memory_space<vmem>>, vector<8x128xf32>
    %350 = arith.truncf %345 : vector<8x128xf32> to vector<8x128xbf16>
    %cst_154 = arith.constant dense<0.000000e+00> : vector<8x128xf32>
    %351 = tpu.matmul %350, %215, %cst_154 {dimension_numbers = #tpu.dot_dimension_numbers<[1], [0], [0], [1], [0, 0, 1, 1], [], []>} : vector<8x128xbf16>, vector<128x128xbf16>, vector<8x128xf32> -> vector<8x128xf32>
    %352 = arith.addf %349, %351 : vector<8x128xf32>
    %353 = arith.negf %352 : vector<8x128xf32>
    %354 = math.exp %353 : vector<8x128xf32>
    %cst_155 = arith.constant 1.000000e+00 : f32
    %355 = vector.broadcast %cst_155 : f32 to vector<8x128xf32>
    %356 = arith.addf %355, %354 : vector<8x128xf32>
    %357 = arith.divf %355, %356 : vector<8x128xf32>
    %358 = math.tanh %352 : vector<8x128xf32>
    %c96_i32_156 = arith.constant 96 : i32
    %359 = tpu.dynamic_rotate %357 by %c96_i32_156 dim 1 : vector<8x128xf32>, i32 -> vector<8x128xf32>
    %c64_i32_157 = arith.constant 64 : i32
    %360 = tpu.dynamic_rotate %358 by %c64_i32_157 dim 1 : vector<8x128xf32>, i32 -> vector<8x128xf32>
    %c32_i32_158 = arith.constant 32 : i32
    %361 = tpu.dynamic_rotate %357 by %c32_i32_158 dim 1 : vector<8x128xf32>, i32 -> vector<8x128xf32>
    %362 = arith.mulf %359, %343 : vector<8x128xf32>
    %363 = arith.mulf %357, %360 : vector<8x128xf32>
    %364 = arith.addf %362, %363 : vector<8x128xf32>
    %365 = math.tanh %364 : vector<8x128xf32>
    %366 = arith.mulf %361, %365 : vector<8x128xf32>
    %c7_i32_159 = arith.constant 7 : i32
    %c8_i32_160 = arith.constant 8 : i32
    %367 = arith.muli %c7_i32_159, %c8_i32_160 : i32
    %368 = tpu.assume_multiple %367, 8 : i32
    %369 = arith.index_cast %368 : i32 to index
    %c0_161 = arith.constant 0 : index
    %370 = vector.load %arg13[%369, %c0_161] : memref<64x128xf32, #tpu.memory_space<vmem>>, vector<8x128xf32>
    %371 = arith.truncf %366 : vector<8x128xf32> to vector<8x128xbf16>
    %cst_162 = arith.constant dense<0.000000e+00> : vector<8x128xf32>
    %372 = tpu.matmul %371, %215, %cst_162 {dimension_numbers = #tpu.dot_dimension_numbers<[1], [0], [0], [1], [0, 0, 1, 1], [], []>} : vector<8x128xbf16>, vector<128x128xbf16>, vector<8x128xf32> -> vector<8x128xf32>
    %373 = arith.addf %370, %372 : vector<8x128xf32>
    %374 = arith.negf %373 : vector<8x128xf32>
    %375 = math.exp %374 : vector<8x128xf32>
    %cst_163 = arith.constant 1.000000e+00 : f32
    %376 = vector.broadcast %cst_163 : f32 to vector<8x128xf32>
    %377 = arith.addf %376, %375 : vector<8x128xf32>
    %378 = arith.divf %376, %377 : vector<8x128xf32>
    %379 = math.tanh %373 : vector<8x128xf32>
    %c96_i32_164 = arith.constant 96 : i32
    %380 = tpu.dynamic_rotate %378 by %c96_i32_164 dim 1 : vector<8x128xf32>, i32 -> vector<8x128xf32>
    %c64_i32_165 = arith.constant 64 : i32
    %381 = tpu.dynamic_rotate %379 by %c64_i32_165 dim 1 : vector<8x128xf32>, i32 -> vector<8x128xf32>
    %c32_i32_166 = arith.constant 32 : i32
    %382 = tpu.dynamic_rotate %378 by %c32_i32_166 dim 1 : vector<8x128xf32>, i32 -> vector<8x128xf32>
    %383 = arith.mulf %380, %364 : vector<8x128xf32>
    %384 = arith.mulf %378, %381 : vector<8x128xf32>
    %385 = arith.addf %383, %384 : vector<8x128xf32>
    %386 = math.tanh %385 : vector<8x128xf32>
    %387 = arith.mulf %382, %386 : vector<8x128xf32>
    %c8_i32_167 = arith.constant 8 : i32
    %c1_168 = arith.constant 1 : index
    %c0_169 = arith.constant 0 : index
    %c0_170 = arith.constant 0 : index
    %388 = vector.load %arg10[%c1_168, %c0_169, %c0_170] : memref<2x8x128xf32, #tpu.memory_space<vmem>>, vector<1x8x128xf32>
    %389 = vector.shape_cast %388 : vector<1x8x128xf32> to vector<8x128xf32>
    %390 = vector.shape_cast %387 : vector<8x128xf32> to vector<1x8x128xf32>
    tpu.vector_store %arg10[%c1_168, %c0_169, %c0_170], %390 {strides = array<i32>} : memref<2x8x128xf32, #tpu.memory_space<vmem>>, vector<1x8x128xf32>,
    %c1_171 = arith.constant 1 : index
    %c0_172 = arith.constant 0 : index
    %c0_173 = arith.constant 0 : index
    %391 = vector.load %arg11[%c1_171, %c0_172, %c0_173] : memref<2x8x128xf32, #tpu.memory_space<vmem>>, vector<1x8x128xf32>
    %392 = vector.shape_cast %391 : vector<1x8x128xf32> to vector<8x128xf32>
    %393 = vector.shape_cast %385 : vector<8x128xf32> to vector<1x8x128xf32>
    tpu.vector_store %arg11[%c1_171, %c0_172, %c0_173], %393 {strides = array<i32>} : memref<2x8x128xf32, #tpu.memory_space<vmem>>, vector<1x8x128xf32>,
    %394 = arith.truncf %387 : vector<8x128xf32> to vector<8x128xbf16>
    %c0_174 = arith.constant 0 : index
    %c0_175 = arith.constant 0 : index
    %395 = vector.load %arg7[%c0_174, %c0_175] : memref<128x128xbf16, #tpu.memory_space<vmem>>, vector<128x128xbf16>
    %cst_176 = arith.constant dense<0.000000e+00> : vector<8x128xf32>
    %396 = tpu.matmul %394, %395, %cst_176 {dimension_numbers = #tpu.dot_dimension_numbers<[1], [0], [0], [1], [0, 0, 1, 1], [], []>} : vector<8x128xbf16>, vector<128x128xbf16>, vector<8x128xf32> -> vector<8x128xf32>
    %c0_177 = arith.constant 0 : index
    %c0_178 = arith.constant 0 : index
    %397 = vector.load %arg8[%c0_177, %c0_178] : memref<1x128xf32, #tpu.memory_space<vmem>>, vector<1x128xf32>
    %398 = vector.broadcast %397 : vector<1x128xf32> to vector<8x128xf32>
    %399 = arith.addf %396, %398 : vector<8x128xf32>
    %400 = arith.negf %399 : vector<8x128xf32>
    %401 = math.exp %400 : vector<8x128xf32>
    %cst_179 = arith.constant 1.000000e+00 : f32
    %402 = vector.broadcast %cst_179 : f32 to vector<8x128xf32>
    %403 = arith.addf %402, %401 : vector<8x128xf32>
    %404 = arith.divf %402, %403 : vector<8x128xf32>
    %c0_180 = arith.constant 0 : index
    %c0_181 = arith.constant 0 : index
    %405 = vector.load %arg9[%c0_180, %c0_181] : memref<8x128xf32, #tpu.memory_space<vmem>>, vector<8x128xf32>
    tpu.vector_store %arg9[%c0_180, %c0_181], %404 {strides = array<i32>} : memref<8x128xf32, #tpu.memory_space<vmem>>, vector<8x128xf32>,
    return
  }
}

</mosaic_0001>

<bundles_post_ra>
// kernel: tpu_custom_call.1
= control target key start
LH: loop header
LB: loop body
LE: loop exit
PB: predicated region body
PF: predicated region fallthrough
CT: control target
= control target key end

     0   :  { %17 = vsyncpa [#allocation5], 0  ;;  %s3367_s0 = inlined_call_operand.vmem [shape: bf16[64,32], index: 0, kind: input, shape index: {}]   ;;  %s3368_s1 = inlined_call_operand.hbm [shape: f32[2,8,128], index: 1, kind: input, shape index: {}, may-alias: {1,10}]   ;;  %s3369_s2 = inlined_call_operand.hbm [shape: f32[2,8,128], index: 2, kind: input, shape index: {}, may-alias: {2,11}]   ;;  %s3370_s3 = inlined_call_operand.vmem [shape: bf16[32,128], index: 3, kind: input, shape index: {}]   ;;  %s3371_s4 = inlined_call_operand.vmem [shape: bf16[1,128,128], index: 4, kind: input, shape index: {}]   ;;  %s3372_s5 = inlined_call_operand.hbm [shape: bf16[2,128,128], index: 5, kind: input, shape index: {}]   ;;  %s3373_s6 = inlined_call_operand.vmem [shape: f32[2,1,128], index: 6, kind: input, shape index: {}]   ;;  %s3374_s7 = inlined_call_operand.hbm [shape: bf16[128,128], index: 7, kind: input, shape index: {}]   ;;  %s3375_s8 = inlined_call_operand.vmem [shape: f32[1,128], index: 8, kind: input, shape index: {}]   ;;  %s3376_s9 = inlined_call_operand.hbm [shape: f32[8,128], index: 9, kind: output, shape index: {0}]   ;;  %s3377_s10 = inlined_call_operand.hbm [shape: f32[2,8,128], index: 10, kind: output, shape index: {1}, may-alias: {1,10}]   ;;  %s3378_s11 = inlined_call_operand.hbm [shape: f32[2,8,128], index: 11, kind: output, shape index: {2}, may-alias: {2,11}]  }
   0x1   :  { %18 = vsyncpa [#allocation8], 0 }
   0x2   :  { %19 = vsyncpa [#allocation11], 0 }
   0x3   :  { %20 = vsyncpa [#allocation6], 0 }
   0x4   :  { %21 = vsyncpa [#allocation14], 0  ;;  %s2652_s17 = smov [#allocation7]   ;;  %s2653_s19 = smov [#allocation4]  }
   0x5   :  { %s41_s18 = sshll.u32 %s2652_s17, 4  ;;  %s29_s20 = sshll.u32 %s2653_s19, 4  ;;  %s42_s18 = int_to_ptr.vmem [resolvable:$true] %s41_s18  ;;  %s2727_s20 = int_to_ptr.vmem [resolvable:$true] %s29_s20 }
   0x6   :  { %s2488_s23 = scalar_lea.hbm %s3369_s2, 256 }
   0x7   :  { %p2489_p0 = scmp.ne.s32.totalorder %s3369_s2, %s2488_s23  ;;  %p2492_p1 = scmp.lt.u32.totalorder %s2488_s23, %s3369_s2 }
   0x9   :  { %p2494_p2 = pnand %p2492_p1, %p2489_p0 }
   0xb   :  { %2497 = shalt.err (!%p2494_p2)
}
   0xc   :  { %s2498_s28 = scalar_lea.vmem %s42_s18, 256  ;;  %p2503_p4 = scmp.lt.s32.totalorder %s42_s18, %s42_s18 }
   0xd   :  { %p2499_p3 = scmp.ne.s32.totalorder %s42_s18, %s2498_s28  ;;  %p2504_p5 = scmp.lt.s32.totalorder %s2498_s28, %s2498_s28 }
   0xf   :  { %p2505_p6 = por %p2504_p5, %p2503_p4 }
  0x11   :  { %p2506_p7 = pnand %p2505_p6, %p2499_p3 }
  0x13   :  { %2509 = shalt.err (!%p2506_p7)
}
  0x14   :  { %s2654_s29 = smov 128   ;;  %s2655_s30 = smov 8  }
  0x15   :  { %47 = dma.hbm_to_vmem [thread:$0]  %s3369_s2, 256, %s42_s18, [#allocation8], %s2654_s29, %s2654_s29, %s2655_s30  }
  0x16   :  { %s2510_s16 = scalar_lea.hbm %s3368_s1, 256 }
  0x17   :  { %p2511_p8 = scmp.ne.s32.totalorder %s3368_s1, %s2510_s16  ;;  %p2514_p9 = scmp.lt.u32.totalorder %s2510_s16, %s3368_s1 }
  0x19   :  { %p2516_p10 = pnand %p2514_p9, %p2511_p8 }
  0x1b   :  { %2519 = shalt.err (!%p2516_p10)
}
  0x1c   :  { %s2520_s23 = scalar_lea.vmem %s2727_s20, 256  ;;  %p2525_p12 = scmp.lt.s32.totalorder %s2727_s20, %s2727_s20 }
  0x1d   :  { %p2521_p11 = scmp.ne.s32.totalorder %s2727_s20, %s2520_s23  ;;  %p2526_p13 = scmp.lt.s32.totalorder %s2520_s23, %s2520_s23 }
  0x1f   :  { %p2527_p0 = por %p2526_p13, %p2525_p12 }
  0x21   :  { %p2528_p1 = pnand %p2527_p0, %p2521_p11 }
  0x23   :  { %2531 = shalt.err (!%p2528_p1)
}
  0x24   :  { %35 = dma.hbm_to_vmem [thread:$0]  %s3368_s1, 256, %s2727_s20, [#allocation5], %s2654_s29, %s2654_s29, %s2655_s30  }
  0x25   :  { %s2656_s24 = smov [#allocation9]   ;;  %s2532_s28 = scalar_lea.hbm %s3372_s5, 2048 }
  0x26   :  { %s57_s25 = sshll.u32 %s2656_s24, 4  ;;  %p2533_p2 = scmp.ne.s32.totalorder %s3372_s5, %s2532_s28  ;;  %s58_s25 = int_to_ptr.vmem [resolvable:$true] %s57_s25 }
  0x27   :  { %p2536_p3 = scmp.lt.u32.totalorder %s2532_s28, %s3372_s5 }
  0x29   :  { %p2538_p4 = pnand %p2536_p3, %p2533_p2 }
  0x2b   :  { %2541 = shalt.err (!%p2538_p4)
}
  0x2c   :  { %s2542_s16 = scalar_lea.vmem %s58_s25, 2048  ;;  %p2547_p6 = scmp.lt.s32.totalorder %s58_s25, %s58_s25 }
  0x2d   :  { %p2543_p5 = scmp.ne.s32.totalorder %s58_s25, %s2542_s16  ;;  %p2548_p7 = scmp.lt.s32.totalorder %s2542_s16, %s2542_s16 }
  0x2f   :  { %p2549_p8 = por %p2548_p7, %p2547_p6 }
  0x31   :  { %p2550_p9 = pnand %p2549_p8, %p2543_p5 }
  0x33   :  { %2553 = shalt.err (!%p2550_p9)
}
  0x34   :  { %s2657_s1 = smov 64   ;;  %s2658_s20 = smov 4  }
  0x35   :  { %63 = dma.hbm_to_vmem [thread:$0]  %s3372_s5, 2048, %s58_s25, [#allocation8], %s2657_s1, %s2657_s1, %s2658_s20  }
  0x36   :  { %s2659_s21 = smov [#allocation10]   ;;  %s2554_s18 = scalar_lea.hbm %s3374_s7, 1024 }
  0x37   :  { %s71_s22 = sshll.u32 %s2659_s21, 4  ;;  %p2555_p10 = scmp.ne.s32.totalorder %s3374_s7, %s2554_s18  ;;  %s72_s22 = int_to_ptr.vmem [resolvable:$true] %s71_s22 }
  0x38   :  { %p2558_p11 = scmp.lt.u32.totalorder %s2554_s18, %s3374_s7 }
  0x3a   :  { %p2560_p12 = pnand %p2558_p11, %p2555_p10 }
  0x3c   :  { %2563 = shalt.err (!%p2560_p12)
}
  0x3d   :  { %s2564_s12 = scalar_lea.vmem %s72_s22, 1024  ;;  %p2569_p0 = scmp.lt.s32.totalorder %s72_s22, %s72_s22 }
  0x3e   :  { %p2565_p13 = scmp.ne.s32.totalorder %s72_s22, %s2564_s12  ;;  %p2570_p1 = scmp.lt.s32.totalorder %s2564_s12, %s2564_s12 }
  0x40   :  { %p2571_p2 = por %p2570_p1, %p2569_p0 }
  0x42   :  { %p2572_p3 = pnand %p2571_p2, %p2565_p13 }
  0x44   :  { %2575 = shalt.err (!%p2572_p3)
}
  0x45   :  { %77 = dma.hbm_to_vmem [thread:$0]  %s3374_s7, 1024, %s72_s22, [#allocation11], %s2657_s1, %s2657_s1, %s2658_s20  }
  0x46   :  { %2642 = dma.done.wait [#allocation5], 256  }
  0x47   :  { %2643 = vsyncadd [#allocation5], 4294967040 }
  0x48   :  { %2644 = dma.done.wait [#allocation8], 2304  }
  0x49   :  { %2645 = vsyncadd [#allocation8], 4294964992 }
  0x4a   :  { %2646 = dma.done.wait [#allocation11], 1024  }
  0x4b   :  { %2647 = vsyncadd [#allocation11], 4294966272  ;;  %v2660_v0 = vmov 0.0   ;;  %vm2661_vm0 = vmmov 0   ;;  %v2795_v1 = vld [vmem:[#allocation9] sm:$0xff]   ;;  %v2798_v2 = vld [vmem:[#allocation9 + $0x8] sm:$0xff]  }
  0x4c   :  { %1939 = vmatprep.subr.bf16.mxu1 %v2660_v0  ;;  %1955 = vmatprep.mubr.msk.bf16.mxu1 %vm2661_vm0, %v2660_v0  ;;  %v2323_v3 = vld [vmem:[%s3370_s3] sm:$0xff]   ;;  %v2805_v4 = vld [vmem:[#allocation9 + $0x10] sm:$0xff]   ;;  %v2325_v5 = vld [vmem:[%s3370_s3 + $0x8] sm:$0xff]   ;;  %vm144_vm1 = vcmask 261120   ;;  %s2662_s24 = smov 32   ;;  %s2663_s26 = smov 96  }
  0x4d   :  { %1940 = vmatpush3.bf16.msra.mxu1 %v2795_v1  ;;  %1927 = vmatprep.subr.bf16.mxu0 %v2323_v3  ;;  %v2326_v6 = vld [vmem:[%s3367_s0] sm:$0xff]   ;;  %v2815_v7 = vld [vmem:[#allocation9 + $0x18] sm:$0xff]   ;;  %v2328_v8 = vld [vmem:[%s3367_s0 + $0x8] sm:$0xff]  }
  0x4e   :  { %1941 = vmatprep.subr.bf16.mxu1 %v2660_v0  ;;  %1928 = vmatpush3.bf16.msra.mxu0 %v2323_v3  ;;  %v2822_v9 = vld [vmem:[#allocation9 + $0x20] sm:$0xff]   ;;  %v2828_v10 = vld [vmem:[#allocation9 + $0x28] sm:$0xff]   ;;  %v2834_v11 = vld [vmem:[#allocation9 + $0x30] sm:$0xff]  }
  0x4f   :  { %1929 = vmatprep.subr.bf16.mxu0 %v2325_v5  ;;  %1931 = vmatprep.mubr.msk.bf16.mxu0 %vm144_vm1, %v2326_v6  ;;  %v2840_v12 = vld [vmem:[#allocation9 + $0x38] sm:$0xff]   ;;  %v246_v13 = vld [vmem:[#allocation4] sm:$0xff]  ;;  %v2330_v29 = vld [vmem:[%s3367_s0 + $0x10] sm:$0xff]  }
  0x50   :  { %v249_v14 = vpack.c.bf16 %v246_v13, %v246_v13  ;;  %v2883_v19 = vld [vmem:[%s3373_s6] ss:$0 sm:$0xff]  ;;  %v2331_v30 = vld [vmem:[%s3367_s0 + $0x18] sm:$0xff]   ;;  %v247_v34 = vld [vmem:[#allocation7] sm:$0xff] }
  0x51   :  { %1942 = vmatpush3.bf16.msra.mxu1 %v2798_v2 }
  0x52   :  { %1943 = vmatprep.subr.bf16.mxu1 %v2660_v0  ;;  %1930 = vmatpush3.bf16.msra.mxu0 %v2325_v5 }
  0x53   :  { %1959 = vmatprep.subr.bf16.mxu0 %v2660_v0 }
  0x55   :  { %1944 = vmatpush3.bf16.msra.mxu1 %v2805_v4  ;;  %1932 = vmatmul.mubr.msk.bf16.vlgmr.msra.gmra.mrb[0].mxu0 %vm144_vm1, %v2328_v8 }
  0x56   :  { %1945 = vmatprep.subr.bf16.mxu1 %v2660_v0  ;;  %1960 = vmatpush3.bf16.msra.mxu0 %v2795_v1 }
  0x57   :  { %1961 = vmatprep.subr.bf16.mxu0 %v2660_v0  ;;  %1935 = vmatprep.mubr.msk.bf16.mxu0 %vm144_vm1, %v2330_v29 }
  0x59   :  { %1946 = vmatpush3.bf16.msra.mxu1 %v2815_v7 }
  0x5a   :  { %1947 = vmatprep.subr.bf16.mxu1 %v2660_v0  ;;  %1962 = vmatpush3.bf16.msra.mxu0 %v2798_v2 }
  0x5b   :  { %1963 = vmatprep.subr.bf16.mxu0 %v2660_v0 }
  0x5d   :  { %1948 = vmatpush3.bf16.msra.mxu1 %v2822_v9  ;;  %1936 = vmatmul.mubr.msk.bf16.gmra.mrb[4].mxu0 %vm144_vm1, %v2331_v30 }
  0x5e   :  { %1949 = vmatprep.subr.bf16.mxu1 %v2660_v0  ;;  %1964 = vmatpush3.bf16.msra.mxu0 %v2805_v4 }
  0x5f   :  { %1965 = vmatprep.subr.bf16.mxu0 %v2660_v0  ;;  %1975 = vmatprep.mubr.msk.bf16.mxu0 %vm2661_vm0, %v2660_v0 }
  0x61   :  { %1950 = vmatpush3.bf16.msra.mxu1 %v2828_v10 }
  0x62   :  { %1951 = vmatprep.subr.bf16.mxu1 %v2660_v0  ;;  %1966 = vmatpush3.bf16.msra.mxu0 %v2815_v7 }
  0x63   :  { %1967 = vmatprep.subr.bf16.mxu0 %v2660_v0 }
  0x65   :  { %1952 = vmatpush3.bf16.msra.mxu1 %v2834_v11 }
  0x66   :  { %1953 = vmatprep.subr.bf16.mxu1 %v2660_v0  ;;  %1968 = vmatpush3.bf16.msra.mxu0 %v2822_v9 }
  0x67   :  { %1969 = vmatprep.subr.bf16.mxu0 %v2660_v0 }
  0x69   :  { %1954 = vmatpush3.bf16.msra.mxu1 %v2840_v12 }
  0x6a   :  { %1979 = vmatprep.subr.bf16.mxu1 %v2660_v0  ;;  %1970 = vmatpush3.bf16.msra.mxu0 %v2828_v10 }
  0x6b   :  { %1971 = vmatprep.subr.bf16.mxu0 %v2660_v0 }
  0x6c   :  { %1956 = vmatmul.mubr.bf16.vlgmr.msra.gmra.mrb[0].mxu1 %v249_v14 }
  0x6d   :  { %1980 = vmatpush3.bf16.msra.mxu1 %v2795_v1  ;;  %1995 = vmatprep.mubr.msk.bf16.mxu1 %vm2661_vm0, %v2660_v0 }
  0x6e   :  { %1981 = vmatprep.subr.bf16.mxu1 %v2660_v0  ;;  %1972 = vmatpush3.bf16.msra.mxu0 %v2834_v11 }
  0x6f   :  { %1973 = vmatprep.subr.bf16.mxu0 %v2660_v0 }
  0x71   :  { %1982 = vmatpush3.bf16.msra.mxu1 %v2798_v2 }
  0x72   :  { %1983 = vmatprep.subr.bf16.mxu1 %v2660_v0  ;;  %1974 = vmatpush3.bf16.msra.mxu0 %v2840_v12 }
  0x73   :  { %1999 = vmatprep.subr.bf16.mxu0 %v2660_v0 }
  0x75   :  { %1984 = vmatpush3.bf16.msra.mxu1 %v2805_v4 }
  0x76   :  { %1985 = vmatprep.subr.bf16.mxu1 %v2660_v0 }
  0x79   :  { %1986 = vmatpush3.bf16.msra.mxu1 %v2815_v7 }
  0x7a   :  { %1987 = vmatprep.subr.bf16.mxu1 %v2660_v0 }
  0x7d   :  { %1988 = vmatpush3.bf16.msra.mxu1 %v2822_v9 }
  0x7e   :  { %1989 = vmatprep.subr.bf16.mxu1 %v2660_v0 }
  0x81   :  { %1990 = vmatpush3.bf16.msra.mxu1 %v2828_v10 }
  0x82   :  { %1991 = vmatprep.subr.bf16.mxu1 %v2660_v0 }
  0x85   :  { %1992 = vmatpush3.bf16.msra.mxu1 %v2834_v11 }
  0x86   :  { %1993 = vmatprep.subr.bf16.mxu1 %v2660_v0 }
  0x89   :  { %1994 = vmatpush3.bf16.msra.mxu1 %v2840_v12 }
  0x8a   :  { %2019 = vmatprep.subr.bf16.mxu1 %v2660_v0 }
 0x128   :  { %v2876_v15 = vpop.f32.mrb[0].mxu0 }
 0x129   :  { %v191_v16 = vpop.f32.mrb[1].mxu0  ;;  %v200_v8 = vadd.f32 %v2876_v15, %v2883_v19 }
 0x12a   :  { %v2878_v17 = vpop.f32.mrb[2].mxu0  ;;  %v192_v20 = vadd.f32 %v2883_v19, %v191_v16 }
 0x12b   :  { %v194_v18 = vpop.f32.mrb[3].mxu0 }
 0x12c   :  { %v195_v47 = vadd.f32 %v2883_v19, %v194_v18 }
 0x130   :  { %v2921_v43 = vpop.f32.mrb[4].mxu0 }
 0x131   :  { %v2923_v44 = vpop.f32.mrb[5].mxu0 }
 0x132   :  { %v2925_v45 = vpop.f32.mrb[6].mxu0 }
 0x133   :  { %v2927_v46 = vpop.f32.mrb[7].mxu0 }
 0x13f   :  { %v332_v21 = vpop.f32.mrb[0].mxu1 }
 0x140   :  { %v338_v22 = vadd.f32 %v332_v21, %v192_v20  ;;  %v1957_v23 = vpop.f32.mrb[1].mxu1 }
 0x141   :  { %v335_v24 = vpop.f32.mrb[2].mxu1 }
 0x142   :  { %v1712_v25 = vmul.f32 -1.442695, %v338_v22  ;;  %v1958_v26 = vpop.f32.mrb[3].mxu1 }
 0x144   :  { %2356 = vpow2.f32 %v1712_v25 }
 0x14e   :  { %v2357_v27 = vpop.eup %2356 }
 0x14f   :  { %v342_v28 = vadd.f32 1.0, %v2357_v27 }
 0x151   :  { %2358 = vrcp.f32 %v342_v28 }
 0x152   :  { %2360 = vtanh.f32 %v338_v22 }
 0x15b   :  { %v2359_v31 = vpop.eup %2358 }
 0x15c   :  { %350 = vrot.lane.b32.xlu1 %v2359_v31, %s2662_s24  ;;  %346 = vrot.lane.b32.xlu0 %v2359_v31, %s2663_s26  ;;  %v2361_v32 = vpop.eup %2360 }
 0x160   :  { %348 = vrot.lane.b32.xlu0 %v2361_v32, %s2657_s1 }
 0x1ce   :  { %v347_v33 = vpop.permute.xlu0 %346  ;;  %v351_v40 = vpop.permute.xlu1 %350 }
 0x1cf   :  { %v352_v36 = vmul.f32 %v347_v33, %v247_v34  ;;  %v203_v34 = vadd.f32 %v2878_v17, %v2883_v19 }
 0x1d2   :  { %v349_v35 = vpop.permute.xlu0 %348 }
 0x1d3   :  { %v353_v37 = vmul.f32 %v2359_v31, %v349_v35 }
 0x1d5   :  { %v354_v38 = vadd.f32 %v353_v37, %v352_v36 }
 0x1d7   :  { %2362 = vtanh.f32 %v354_v38 }
 0x1e1   :  { %v2363_v39 = vpop.eup %2362 }
 0x1e2   :  { %v2899_v41 = vmul.f32 %v2363_v39, %v351_v40 }
 0x1e4   :  { %v360_v42 = vpack.c.bf16 %v2899_v41, %v2899_v41 }
 0x1e6   :  { %1976 = vmatmul.mubr.bf16.vlgmr.msra.gmra.mrb[8].mxu0 %v360_v42 }
 0x1e7   :  { %2000 = vmatpush3.bf16.msra.mxu0 %v2795_v1  ;;  %2015 = vmatprep.mubr.msk.bf16.mxu0 %vm2661_vm0, %v2660_v0 }
 0x1e8   :  { %2001 = vmatprep.subr.bf16.mxu0 %v2660_v0 }
 0x1eb   :  { %2002 = vmatpush3.bf16.msra.mxu0 %v2798_v2 }
 0x1ec   :  { %2003 = vmatprep.subr.bf16.mxu0 %v2660_v0 }
 0x1ef   :  { %2004 = vmatpush3.bf16.msra.mxu0 %v2805_v4 }
 0x1f0   :  { %2005 = vmatprep.subr.bf16.mxu0 %v2660_v0 }
 0x1f3   :  { %2006 = vmatpush3.bf16.msra.mxu0 %v2815_v7 }
 0x1f4   :  { %2007 = vmatprep.subr.bf16.mxu0 %v2660_v0 }
 0x1f7   :  { %2008 = vmatpush3.bf16.msra.mxu0 %v2822_v9 }
 0x1f8   :  { %2009 = vmatprep.subr.bf16.mxu0 %v2660_v0 }
 0x1fb   :  { %2010 = vmatpush3.bf16.msra.mxu0 %v2828_v10 }
 0x1fc   :  { %2011 = vmatprep.subr.bf16.mxu0 %v2660_v0 }
 0x1ff   :  { %2012 = vmatpush3.bf16.msra.mxu0 %v2834_v11 }
 0x200   :  { %2013 = vmatprep.subr.bf16.mxu0 %v2660_v0 }
 0x203   :  { %2014 = vmatpush3.bf16.msra.mxu0 %v2840_v12 }
 0x204   :  { %2039 = vmatprep.subr.bf16.mxu0 %v2660_v0 }
 0x2b9   :  { %v395_v48 = vpop.f32.mrb[8].mxu0 }
 0x2ba   :  { %v401_v49 = vadd.f32 %v395_v48, %v195_v47  ;;  %v1977_v50 = vpop.f32.mrb[9].mxu0 }
 0x2bb   :  { %v398_v51 = vpop.f32.mrb[10].mxu0 }
 0x2bc   :  { %v1713_v52 = vmul.f32 -1.442695, %v401_v49  ;;  %2364 = vtanh.f32 %v401_v49  ;;  %v1978_v53 = vpop.f32.mrb[11].mxu0 }
 0x2be   :  { %2366 = vpow2.f32 %v1713_v52 }
 0x2c6   :  { %v2365_v54 = vpop.eup %2364 }
 0x2c7   :  { %411 = vrot.lane.b32.xlu0 %v2365_v54, %s2657_s1 }
 0x2c8   :  { %v2367_v55 = vpop.eup %2366 }
 0x2c9   :  { %v405_v56 = vadd.f32 1.0, %v2367_v55 }
 0x2cb   :  { %2368 = vrcp.f32 %v405_v56 }
 0x2d5   :  { %v2369_v57 = vpop.eup %2368 }
 0x2d6   :  { %409 = vrot.lane.b32.xlu1 %v2369_v57, %s2663_s26 }
 0x2da   :  { %413 = vrot.lane.b32.xlu1 %v2369_v57, %s2662_s24 }
 0x339   :  { %v412_v58 = vpop.permute.xlu0 %411 }
 0x33a   :  { %v416_v60 = vmul.f32 %v2369_v57, %v412_v58  ;;  %v208_v58 = vadd.f32 %v2883_v19, %v2923_v44 }
 0x348   :  { %v410_v59 = vpop.permute.xlu1 %409 }
 0x349   :  { %v415_v61 = vmul.f32 %v410_v59, %v354_v38 }
 0x34b   :  { %v417_v62 = vadd.f32 %v416_v60, %v415_v61 }
 0x34c   :  { %v414_v3 = vpop.permute.xlu1 %413 }
 0x34d   :  { %2370 = vtanh.f32 %v417_v62 }
 0x357   :  { %v2371_v63 = vpop.eup %2370 }
 0x358   :  { %v2933_v5 = vmul.f32 %v2371_v63, %v414_v3 }
 0x35a   :  { %v424_v6 = vpack.c.bf16 %v2933_v5, %v2933_v5 }
 0x35c   :  { %1996 = vmatmul.mubr.bf16.vlgmr.msra.gmra.mrb[4].mxu1 %v424_v6 }
 0x35d   :  { %2020 = vmatpush3.bf16.msra.mxu1 %v2795_v1  ;;  %2035 = vmatprep.mubr.msk.bf16.mxu1 %vm2661_vm0, %v2660_v0 }
 0x35e   :  { %2021 = vmatprep.subr.bf16.mxu1 %v2660_v0 }
 0x361   :  { %2022 = vmatpush3.bf16.msra.mxu1 %v2798_v2 }
 0x362   :  { %2023 = vmatprep.subr.bf16.mxu1 %v2660_v0 }
 0x365   :  { %2024 = vmatpush3.bf16.msra.mxu1 %v2805_v4 }
 0x366   :  { %2025 = vmatprep.subr.bf16.mxu1 %v2660_v0 }
 0x369   :  { %2026 = vmatpush3.bf16.msra.mxu1 %v2815_v7 }
 0x36a   :  { %2027 = vmatprep.subr.bf16.mxu1 %v2660_v0 }
 0x36d   :  { %2028 = vmatpush3.bf16.msra.mxu1 %v2822_v9 }
 0x36e   :  { %2029 = vmatprep.subr.bf16.mxu1 %v2660_v0 }
 0x371   :  { %2030 = vmatpush3.bf16.msra.mxu1 %v2828_v10 }
 0x372   :  { %2031 = vmatprep.subr.bf16.mxu1 %v2660_v0 }
 0x375   :  { %2032 = vmatpush3.bf16.msra.mxu1 %v2834_v11 }
 0x376   :  { %2033 = vmatprep.subr.bf16.mxu1 %v2660_v0 }
 0x379   :  { %2034 = vmatpush3.bf16.msra.mxu1 %v2840_v12 }
 0x37a   :  { %2059 = vmatprep.subr.bf16.mxu1 %v2660_v0 }
 0x42f   :  { %v459_v13 = vpop.f32.mrb[4].mxu1 }
 0x430   :  { %v465_v14 = vadd.f32 %v459_v13, %v200_v8  ;;  %v1997_v16 = vpop.f32.mrb[5].mxu1 }
 0x431   :  { %v462_v18 = vpop.f32.mrb[6].mxu1 }
 0x432   :  { %v1714_v20 = vmul.f32 -1.442695, %v465_v14  ;;  %2372 = vtanh.f32 %v465_v14  ;;  %v1998_v21 = vpop.f32.mrb[7].mxu1 }
 0x434   :  { %2374 = vpow2.f32 %v1714_v20 }
 0x43c   :  { %v2373_v22 = vpop.eup %2372 }
 0x43d   :  { %475 = vrot.lane.b32.xlu1 %v2373_v22, %s2657_s1 }
 0x43e   :  { %v2375_v23 = vpop.eup %2374 }
 0x43f   :  { %v469_v24 = vadd.f32 1.0, %v2375_v23 }
 0x441   :  { %2376 = vrcp.f32 %v469_v24 }
 0x44b   :  { %v2377_v25 = vpop.eup %2376 }
 0x44c   :  { %473 = vrot.lane.b32.xlu0 %v2377_v25, %s2663_s26 }
 0x450   :  { %477 = vrot.lane.b32.xlu0 %v2377_v25, %s2662_s24 }
 0x4af   :  { %v476_v15 = vpop.permute.xlu1 %475 }
 0x4b0   :  { %v480_v27 = vmul.f32 %v2377_v25, %v476_v15 }
 0x4be   :  { %v474_v26 = vpop.permute.xlu0 %473 }
 0x4bf   :  { %v479_v28 = vmul.f32 %v474_v26, %v417_v62 }
 0x4c1   :  { %v481_v29 = vadd.f32 %v480_v27, %v479_v28 }
 0x4c2   :  { %v478_v31 = vpop.permute.xlu0 %477 }
 0x4c3   :  { %2378 = vtanh.f32 %v481_v29 }
 0x4cd   :  { %v2379_v30 = vpop.eup %2378 }
 0x4ce   :  { %v2960_v32 = vmul.f32 %v2379_v30, %v478_v31 }
 0x4d0   :  { %v488_v33 = vpack.c.bf16 %v2960_v32, %v2960_v32 }
 0x4d2   :  { %2016 = vmatmul.mubr.bf16.vlgmr.msra.gmra.mrb[12].mxu0 %v488_v33 }
 0x4d3   :  { %2040 = vmatpush3.bf16.msra.mxu0 %v2795_v1  ;;  %2055 = vmatprep.mubr.msk.bf16.mxu0 %vm2661_vm0, %v2660_v0 }
 0x4d4   :  { %2041 = vmatprep.subr.bf16.mxu0 %v2660_v0 }
 0x4d7   :  { %2042 = vmatpush3.bf16.msra.mxu0 %v2798_v2 }
 0x4d8   :  { %2043 = vmatprep.subr.bf16.mxu0 %v2660_v0 }
 0x4db   :  { %2044 = vmatpush3.bf16.msra.mxu0 %v2805_v4 }
 0x4dc   :  { %2045 = vmatprep.subr.bf16.mxu0 %v2660_v0 }
 0x4df   :  { %2046 = vmatpush3.bf16.msra.mxu0 %v2815_v7 }
 0x4e0   :  { %2047 = vmatprep.subr.bf16.mxu0 %v2660_v0 }
 0x4e3   :  { %2048 = vmatpush3.bf16.msra.mxu0 %v2822_v9 }
 0x4e4   :  { %2049 = vmatprep.subr.bf16.mxu0 %v2660_v0 }
 0x4e7   :  { %2050 = vmatpush3.bf16.msra.mxu0 %v2828_v10 }
 0x4e8   :  { %2051 = vmatprep.subr.bf16.mxu0 %v2660_v0 }
 0x4eb   :  { %2052 = vmatpush3.bf16.msra.mxu0 %v2834_v11 }
 0x4ec   :  { %2053 = vmatprep.subr.bf16.mxu0 %v2660_v0 }
 0x4ef   :  { %2054 = vmatpush3.bf16.msra.mxu0 %v2840_v12 }
 0x4f0   :  { %2079 = vmatprep.subr.bf16.mxu0 %v2660_v0 }
 0x5a5   :  { %v523_v35 = vpop.f32.mrb[12].mxu0 }
 0x5a6   :  { %v529_v36 = vadd.f32 %v523_v35, %v203_v34  ;;  %v2017_v37 = vpop.f32.mrb[13].mxu0 }
 0x5a7   :  { %v526_v38 = vpop.f32.mrb[14].mxu0 }
 0x5a8   :  { %v1715_v39 = vmul.f32 -1.442695, %v529_v36  ;;  %2380 = vtanh.f32 %v529_v36  ;;  %v2018_v40 = vpop.f32.mrb[15].mxu0  ;;  %v2333_v38 = vld [vmem:[%s3371_s4 + $0x8] sm:$0xff]  }
 0x5a9   :  { %v2334_v40 = vld [vmem:[%s3371_s4 + $0x10] sm:$0xff]  }
 0x5aa   :  { %2382 = vpow2.f32 %v1715_v39  ;;  %v816_v39 = vpack.c.bf16 %v2933_v5, %v2899_v41  ;;  %v2336_v41 = vld [vmem:[%s3371_s4 + $0x20] sm:$0xff]   ;;  %v2337_v5 = vld [vmem:[%s3371_s4 + $0x28] sm:$0xff]  }
 0x5b2   :  { %v2381_v42 = vpop.eup %2380 }
 0x5b3   :  { %539 = vrot.lane.b32.xlu0 %v2381_v42, %s2657_s1  ;;  %v2335_v42 = vld [vmem:[%s3371_s4 + $0x18] sm:$0xff]  }
 0x5b4   :  { %v2383_v47 = vpop.eup %2382 }
 0x5b5   :  { %v533_v48 = vadd.f32 1.0, %v2383_v47  ;;  %v2338_v47 = vld [vmem:[%s3371_s4 + $0x30] sm:$0xff]  }
 0x5b7   :  { %2384 = vrcp.f32 %v533_v48  ;;  %v2339_v48 = vld [vmem:[%s3371_s4 + $0x38] sm:$0xff]  }
 0x5c1   :  { %v2385_v49 = vpop.eup %2384 }
 0x5c2   :  { %537 = vrot.lane.b32.xlu1 %v2385_v49, %s2663_s26 }
 0x5c6   :  { %541 = vrot.lane.b32.xlu1 %v2385_v49, %s2662_s24 }
 0x625   :  { %v540_v17 = vpop.permute.xlu0 %539 }
 0x626   :  { %v544_v51 = vmul.f32 %v2385_v49, %v540_v17 }
 0x634   :  { %v538_v50 = vpop.permute.xlu1 %537 }
 0x635   :  { %v543_v52 = vmul.f32 %v538_v50, %v481_v29  ;;  %v216_v50 = vadd.f32 %v2921_v43, %v2883_v19 }
 0x637   :  { %v545_v53 = vadd.f32 %v544_v51, %v543_v52 }
 0x638   :  { %v542_v55 = vpop.permute.xlu1 %541 }
 0x639   :  { %2386 = vtanh.f32 %v545_v53 }
 0x643   :  { %v2387_v54 = vpop.eup %2386 }
 0x644   :  { %v2987_v56 = vmul.f32 %v2387_v54, %v542_v55 }
 0x646   :  { %v552_v57 = vpack.c.bf16 %v2987_v56, %v2987_v56  ;;  %v817_v49 = vpack.c.bf16 %v2987_v56, %v2960_v32 }
 0x648   :  { %2036 = vmatmul.mubr.bf16.vlgmr.msra.gmra.mrb[8].mxu1 %v552_v57 }
 0x649   :  { %2060 = vmatpush3.bf16.msra.mxu1 %v2795_v1  ;;  %2075 = vmatprep.mubr.msk.bf16.mxu1 %vm2661_vm0, %v2660_v0 }
 0x64a   :  { %2061 = vmatprep.subr.bf16.mxu1 %v2660_v0 }
 0x64d   :  { %2062 = vmatpush3.bf16.msra.mxu1 %v2798_v2 }
 0x64e   :  { %2063 = vmatprep.subr.bf16.mxu1 %v2660_v0 }
 0x651   :  { %2064 = vmatpush3.bf16.msra.mxu1 %v2805_v4 }
 0x652   :  { %2065 = vmatprep.subr.bf16.mxu1 %v2660_v0 }
 0x655   :  { %2066 = vmatpush3.bf16.msra.mxu1 %v2815_v7 }
 0x656   :  { %2067 = vmatprep.subr.bf16.mxu1 %v2660_v0 }
 0x659   :  { %2068 = vmatpush3.bf16.msra.mxu1 %v2822_v9 }
 0x65a   :  { %2069 = vmatprep.subr.bf16.mxu1 %v2660_v0 }
 0x65d   :  { %2070 = vmatpush3.bf16.msra.mxu1 %v2828_v10 }
 0x65e   :  { %2071 = vmatprep.subr.bf16.mxu1 %v2660_v0 }
 0x661   :  { %2072 = vmatpush3.bf16.msra.mxu1 %v2834_v11 }
 0x662   :  { %2073 = vmatprep.subr.bf16.mxu1 %v2660_v0 }
 0x665   :  { %2074 = vmatpush3.bf16.msra.mxu1 %v2840_v12 }
 0x71b   :  { %v587_v59 = vpop.f32.mrb[8].mxu1 }
 0x71c   :  { %v593_v60 = vadd.f32 %v587_v59, %v208_v58  ;;  %v2037_v61 = vpop.f32.mrb[9].mxu1 }
 0x71d   :  { %v590_v62 = vpop.f32.mrb[10].mxu1 }
 0x71e   :  { %v1716_v63 = vmul.f32 -1.442695, %v593_v60  ;;  %2388 = vtanh.f32 %v593_v60  ;;  %v2038_v3 = vpop.f32.mrb[11].mxu1  ;;  %v3084_v62 = vld [vmem:[#allocation9 + $0x40] sm:$0xff]  }
 0x71f   :  { %v3090_v3 = vld [vmem:[#allocation9 + $0x48] sm:$0xff]  }
 0x720   :  { %2390 = vpow2.f32 %v1716_v63 }
 0x728   :  { %v2389_v6 = vpop.eup %2388 }
 0x729   :  { %603 = vrot.lane.b32.xlu1 %v2389_v6, %s2657_s1  ;;  %v3094_v6 = vld [vmem:[#allocation9 + $0x50] sm:$0xff]  }
 0x72a   :  { %v2391_v8 = vpop.eup %2390 }
 0x72b   :  { %v597_v13 = vadd.f32 1.0, %v2391_v8  ;;  %v3098_v8 = vld [vmem:[#allocation9 + $0x58] sm:$0xff]  }
 0x72d   :  { %2392 = vrcp.f32 %v597_v13  ;;  %v3102_v13 = vld [vmem:[#allocation9 + $0x60] sm:$0xff]  }
 0x737   :  { %v2393_v14 = vpop.eup %2392 }
 0x738   :  { %601 = vrot.lane.b32.xlu0 %v2393_v14, %s2663_s26 }
 0x73c   :  { %605 = vrot.lane.b32.xlu0 %v2393_v14, %s2662_s24 }
 0x79b   :  { %v604_v44 = vpop.permute.xlu1 %603 }
 0x79c   :  { %v608_v18 = vmul.f32 %v2393_v14, %v604_v44  ;;  %v3106_v14 = vld [vmem:[#allocation9 + $0x68] sm:$0xff]   ;;  %v3110_v44 = vld [vmem:[#allocation9 + $0x70] sm:$0xff]  }
 0x7aa   :  { %v602_v16 = vpop.permute.xlu0 %601 }
 0x7ab   :  { %v607_v20 = vmul.f32 %v602_v16, %v545_v53  ;;  %v3114_v16 = vld [vmem:[#allocation9 + $0x78] sm:$0xff]  }
 0x7ad   :  { %v609_v21 = vadd.f32 %v608_v18, %v607_v20 }
 0x7ae   :  { %v606_v23 = vpop.permute.xlu0 %605 }
 0x7af   :  { %2394 = vtanh.f32 %v609_v21 }
 0x7b9   :  { %v2395_v22 = vpop.eup %2394 }
 0x7ba   :  { %v3013_v24 = vmul.f32 %v2395_v22, %v606_v23 }
 0x7bc   :  { %v616_v25 = vpack.c.bf16 %v3013_v24, %v3013_v24 }
 0x7be   :  { %2056 = vmatmul.mubr.bf16.vlgmr.msra.gmra.mrb[16].mxu0 %v616_v25 }
 0x7bf   :  { %2080 = vmatpush3.bf16.msra.mxu0 %v2795_v1  ;;  %2095 = vmatprep.mubr.msk.bf16.mxu0 %vm2661_vm0, %v2660_v0  ;;  %v211_v1 = vadd.f32 %v2883_v19, %v2927_v46  ;;  %v2332_v46 = vld [vmem:[%s3371_s4] sm:$0xff]  }
 0x7c0   :  { %2081 = vmatprep.subr.bf16.mxu0 %v2660_v0  ;;  %2099 = vmatprep.subr.bf16.mxu1 %v2332_v46 }
 0x7c3   :  { %2082 = vmatpush3.bf16.msra.mxu0 %v2798_v2 }
 0x7c4   :  { %2083 = vmatprep.subr.bf16.mxu0 %v2660_v0 }
 0x7c7   :  { %2084 = vmatpush3.bf16.msra.mxu0 %v2805_v4 }
 0x7c8   :  { %2085 = vmatprep.subr.bf16.mxu0 %v2660_v0 }
 0x7cb   :  { %2086 = vmatpush3.bf16.msra.mxu0 %v2815_v7 }
 0x7cc   :  { %2087 = vmatprep.subr.bf16.mxu0 %v2660_v0 }
 0x7cf   :  { %2088 = vmatpush3.bf16.msra.mxu0 %v2822_v9 }
 0x7d0   :  { %2089 = vmatprep.subr.bf16.mxu0 %v2660_v0 }
 0x7d3   :  { %2090 = vmatpush3.bf16.msra.mxu0 %v2828_v10 }
 0x7d4   :  { %2091 = vmatprep.subr.bf16.mxu0 %v2660_v0 }
 0x7d7   :  { %2092 = vmatpush3.bf16.msra.mxu0 %v2834_v11 }
 0x7d8   :  { %2093 = vmatprep.subr.bf16.mxu0 %v2660_v0 }
 0x7db   :  { %2094 = vmatpush3.bf16.msra.mxu0 %v2840_v12 }
 0x7dc   :  { %2123 = vmatprep.subr.bf16.mxu0 %v2660_v0 }
 0x891   :  { %v651_v2 = vpop.f32.mrb[16].mxu0 }
 0x892   :  { %v657_v4 = vadd.f32 %v651_v2, %v211_v1  ;;  %v2057_v7 = vpop.f32.mrb[17].mxu0 }
 0x893   :  { %v654_v9 = vpop.f32.mrb[18].mxu0 }
 0x894   :  { %v1717_v15 = vmul.f32 -1.442695, %v657_v4  ;;  %2396 = vtanh.f32 %v657_v4  ;;  %v2058_v10 = vpop.f32.mrb[19].mxu0  ;;  %v983_v4 = vld [vmem:[#allocation4 + $0x8] sm:$0xff]  ;;  %v219_v9 = vadd.f32 %v2925_v45, %v2883_v19 }
 0x895   :  { %v987_v7 = vpack.c.bf16 %v983_v4, %v983_v4 }
 0x896   :  { %2398 = vpow2.f32 %v1717_v15 }
 0x89e   :  { %v2397_v26 = vpop.eup %2396 }
 0x89f   :  { %667 = vrot.lane.b32.xlu0 %v2397_v26, %s2657_s1 }
 0x8a0   :  { %v2399_v11 = vpop.eup %2398 }
 0x8a1   :  { %v661_v27 = vadd.f32 1.0, %v2399_v11 }
 0x8a3   :  { %2400 = vrcp.f32 %v661_v27 }
 0x8ad   :  { %v2401_v12 = vpop.eup %2400 }
 0x8ae   :  { %665 = vrot.lane.b32.xlu1 %v2401_v12, %s2663_s26 }
 0x8b2   :  { %669 = vrot.lane.b32.xlu1 %v2401_v12, %s2662_s24 }
 0x911   :  { %v668_v28 = vpop.permute.xlu0 %667 }
 0x912   :  { %v672_v30 = vmul.f32 %v2401_v12, %v668_v28 }
 0x920   :  { %v666_v29 = vpop.permute.xlu1 %665 }
 0x921   :  { %v671_v31 = vmul.f32 %v666_v29, %v609_v21 }
 0x923   :  { %v3043_v33 = vadd.f32 %v672_v30, %v671_v31  ;;  %v3168_v31 = vld [vmem:[%s3373_s6 + $0x1] ss:$0 sm:$0xff]  ;;  %s2664_s6 = smov [#allocation13]  }
 0x924   :  { %v670_v35 = vpop.permute.xlu1 %669 }
 0x925   :  { %2402 = vtanh.f32 %v3043_v33 }
 0x92f   :  { %v2403_v34 = vpop.eup %2402 }
 0x930   :  { %v675_v36 = vmul.f32 %v2403_v34, %v670_v35 }
 0x932   :  { %v680_v37 = vpack.c.bf16 %v675_v36, %v675_v36  ;;  %v818_v17 = vpack.c.bf16 %v675_v36, %v3013_v24 }
 0x934   :  { %2076 = vmatmul.mubr.bf16.vlgmr.msra.gmra.mrb[12].mxu1 %v680_v37 }
 0x935   :  { %2100 = vmatpush3.bf16.msra.mxu1 %v2332_v46  ;;  %2115 = vmatprep.mubr.bf16.mxu1 %v816_v39 }
 0x936   :  { %2101 = vmatprep.subr.bf16.mxu1 %v2333_v38 }
 0x939   :  { %2102 = vmatpush3.bf16.msra.mxu1 %v2333_v38 }
 0x93a   :  { %2103 = vmatprep.subr.bf16.mxu1 %v2334_v40 }
 0x93d   :  { %2104 = vmatpush3.bf16.msra.mxu1 %v2334_v40 }
 0x93e   :  { %2105 = vmatprep.subr.bf16.mxu1 %v2335_v42 }
 0x941   :  { %2106 = vmatpush3.bf16.msra.mxu1 %v2335_v42 }
 0x942   :  { %2107 = vmatprep.subr.bf16.mxu1 %v2336_v41 }
 0x945   :  { %2108 = vmatpush3.bf16.msra.mxu1 %v2336_v41 }
 0x946   :  { %2109 = vmatprep.subr.bf16.mxu1 %v2337_v5 }
 0x949   :  { %2110 = vmatpush3.bf16.msra.mxu1 %v2337_v5 }
 0x94a   :  { %2111 = vmatprep.subr.bf16.mxu1 %v2338_v47 }
 0x94d   :  { %2112 = vmatpush3.bf16.msra.mxu1 %v2338_v47 }
 0x94e   :  { %2113 = vmatprep.subr.bf16.mxu1 %v2339_v48 }
 0x951   :  { %2114 = vmatpush3.bf16.msra.mxu1 %v2339_v48 }
 0x952   :  { %2143 = vmatprep.subr.bf16.mxu1 %v2660_v0 }
 0x954   :  { %2116 = vmatmul.mubr.bf16.vlgmr.msra.gmra.mrb[16].mxu1 %v817_v49 }
 0x955   :  { %2119 = vmatprep.mubr.bf16.mxu1 %v818_v17  ;;  %2144 = vmatpush3.bf16.msra.mxu1 %v3084_v62 }
 0x956   :  { %2145 = vmatprep.subr.bf16.mxu1 %v2660_v0 }
 0x959   :  { %2146 = vmatpush3.bf16.msra.mxu1 %v3090_v3 }
 0x95a   :  { %2147 = vmatprep.subr.bf16.mxu1 %v2660_v0 }
 0x95d   :  { %2148 = vmatpush3.bf16.msra.mxu1 %v3094_v6 }
 0x95e   :  { %2149 = vmatprep.subr.bf16.mxu1 %v2660_v0 }
 0x961   :  { %2150 = vmatpush3.bf16.msra.mxu1 %v3098_v8 }
 0x962   :  { %2151 = vmatprep.subr.bf16.mxu1 %v2660_v0 }
 0x965   :  { %2152 = vmatpush3.bf16.msra.mxu1 %v3102_v13 }
 0x966   :  { %2153 = vmatprep.subr.bf16.mxu1 %v2660_v0 }
 0x969   :  { %2154 = vmatpush3.bf16.msra.mxu1 %v3106_v14 }
 0x96a   :  { %2155 = vmatprep.subr.bf16.mxu1 %v2660_v0 }
 0x96d   :  { %2156 = vmatpush3.bf16.msra.mxu1 %v3110_v44 }
 0x96e   :  { %2157 = vmatprep.subr.bf16.mxu1 %v2660_v0 }
 0x971   :  { %2158 = vmatpush3.bf16.msra.mxu1 %v3114_v16 }
 0x972   :  { %2183 = vmatprep.subr.bf16.mxu1 %v2660_v0 }
 0xa07   :  { %v715_v51 = vpop.f32.mrb[12].mxu1 }
 0xa08   :  { %v721_v52 = vadd.f32 %v715_v51, %v216_v50  ;;  %v2077_v53 = vpop.f32.mrb[13].mxu1  ;;  %v985_v50 = vld [vmem:[#allocation7 + $0x8] sm:$0xff] }
 0xa09   :  { %v718_v54 = vpop.f32.mrb[14].mxu1 }
 0xa0a   :  { %v1718_v55 = vmul.f32 -1.442695, %v721_v52  ;;  %2404 = vtanh.f32 %v721_v52  ;;  %v2078_v57 = vpop.f32.mrb[15].mxu1 }
 0xa0c   :  { %2406 = vpow2.f32 %v1718_v55 }
 0xa14   :  { %v2405_v58 = vpop.eup %2404 }
 0xa15   :  { %731 = vrot.lane.b32.xlu1 %v2405_v58, %s2657_s1 }
 0xa16   :  { %v2407_v32 = vpop.eup %2406 }
 0xa17   :  { %v725_v56 = vadd.f32 1.0, %v2407_v32 }
 0xa19   :  { %2408 = vrcp.f32 %v725_v56 }
 0xa23   :  { %v2409_v59 = vpop.eup %2408 }
 0xa24   :  { %729 = vrot.lane.b32.xlu0 %v2409_v59, %s2663_s26 }
 0xa27   :  { %v3077_v60 = vpop.f32.mrb[16].mxu1 }
 0xa28   :  { %v3079_v43 = vpop.f32.mrb[17].mxu1  ;;  %733 = vrot.lane.b32.xlu0 %v2409_v59, %s2662_s24 }
 0xa29   :  { %v3082_v61 = vpop.f32.mrb[18].mxu1  ;;  %v927_v19 = vadd.f32 %v3168_v31, %v3079_v43 }
 0xa2a   :  { %v3086_v63 = vpop.f32.mrb[19].mxu1 }
 0xa87   :  { %v732_v18 = vpop.permute.xlu1 %731 }
 0xa88   :  { %v736_v21 = vmul.f32 %v2409_v59, %v732_v18 }
 0xa96   :  { %v730_v20 = vpop.permute.xlu0 %729 }
 0xa97   :  { %v735_v22 = vmul.f32 %v730_v20, %v3043_v33 }
 0xa99   :  { %v3119_v23 = vadd.f32 %v736_v21, %v735_v22 }
 0xa9a   :  { %v734_v25 = vpop.permute.xlu0 %733 }
 0xa9b   :  { %2410 = vtanh.f32 %v3119_v23 }
 0xaa5   :  { %v2411_v24 = vpop.eup %2410 }
 0xaa6   :  { %v3122_v1 = vmul.f32 %v2411_v24, %v734_v25  ;;  %v930_v24 = vadd.f32 %v3168_v31, %v3086_v63 }
 0xaa8   :  { %v744_v2 = vpack.c.bf16 %v3122_v1, %v3122_v1 }
 0xaaa   :  { %2096 = vmatmul.mubr.bf16.vlgmr.msra.gmra.mrb[20].mxu0 %v744_v2 }
 0xaab   :  { %2124 = vmatpush3.bf16.msra.mxu0 %v3084_v62  ;;  %2139 = vmatprep.mubr.msk.bf16.mxu0 %vm2661_vm0, %v2660_v0 }
 0xaac   :  { %2125 = vmatprep.subr.bf16.mxu0 %v2660_v0 }
 0xaaf   :  { %2126 = vmatpush3.bf16.msra.mxu0 %v3090_v3 }
 0xab0   :  { %2127 = vmatprep.subr.bf16.mxu0 %v2660_v0 }
 0xab3   :  { %2128 = vmatpush3.bf16.msra.mxu0 %v3094_v6 }
 0xab4   :  { %2129 = vmatprep.subr.bf16.mxu0 %v2660_v0 }
 0xab7   :  { %2130 = vmatpush3.bf16.msra.mxu0 %v3098_v8 }
 0xab8   :  { %2131 = vmatprep.subr.bf16.mxu0 %v2660_v0 }
 0xabb   :  { %2132 = vmatpush3.bf16.msra.mxu0 %v3102_v13 }
 0xabc   :  { %2133 = vmatprep.subr.bf16.mxu0 %v2660_v0 }
 0xabf   :  { %2134 = vmatpush3.bf16.msra.mxu0 %v3106_v14 }
 0xac0   :  { %2135 = vmatprep.subr.bf16.mxu0 %v2660_v0 }
 0xac3   :  { %2136 = vmatpush3.bf16.msra.mxu0 %v3110_v44 }
 0xac4   :  { %2137 = vmatprep.subr.bf16.mxu0 %v2660_v0 }
 0xac7   :  { %2138 = vmatpush3.bf16.msra.mxu0 %v3114_v16 }
 0xac8   :  { %2163 = vmatprep.subr.bf16.mxu0 %v2660_v0 }
 0xaca   :  { %2140 = vmatmul.mubr.bf16.vlgmr.msra.gmra.mrb[24].mxu0 %v987_v7 }
 0xacb   :  { %2164 = vmatpush3.bf16.msra.mxu0 %v3084_v62  ;;  %2179 = vmatprep.mubr.msk.bf16.mxu0 %vm2661_vm0, %v2660_v0 }
 0xacc   :  { %2165 = vmatprep.subr.bf16.mxu0 %v2660_v0 }
 0xacf   :  { %2166 = vmatpush3.bf16.msra.mxu0 %v3090_v3 }
 0xad0   :  { %2167 = vmatprep.subr.bf16.mxu0 %v2660_v0 }
 0xad3   :  { %2168 = vmatpush3.bf16.msra.mxu0 %v3094_v6 }
 0xad4   :  { %2169 = vmatprep.subr.bf16.mxu0 %v2660_v0 }
 0xad7   :  { %2170 = vmatpush3.bf16.msra.mxu0 %v3098_v8 }
 0xad8   :  { %2171 = vmatprep.subr.bf16.mxu0 %v2660_v0 }
 0xadb   :  { %2172 = vmatpush3.bf16.msra.mxu0 %v3102_v13 }
 0xadc   :  { %2173 = vmatprep.subr.bf16.mxu0 %v2660_v0 }
 0xadf   :  { %2174 = vmatpush3.bf16.msra.mxu0 %v3106_v14 }
 0xae0   :  { %2175 = vmatprep.subr.bf16.mxu0 %v2660_v0 }
 0xae3   :  { %2176 = vmatpush3.bf16.msra.mxu0 %v3110_v44 }
 0xae4   :  { %2177 = vmatprep.subr.bf16.mxu0 %v2660_v0 }
 0xae7   :  { %2178 = vmatpush3.bf16.msra.mxu0 %v3114_v16 }
 0xae8   :  { %2203 = vmatprep.subr.bf16.mxu0 %v2660_v0 }
 0xb7d   :  { %v779_v15 = vpop.f32.mrb[20].mxu0 }
 0xb7e   :  { %v785_v10 = vadd.f32 %v779_v15, %v219_v9  ;;  %v2097_v26 = vpop.f32.mrb[21].mxu0 }
 0xb7f   :  { %v782_v11 = vpop.f32.mrb[22].mxu0 }
 0xb80   :  { %v1719_v27 = vmul.f32 -1.442695, %v785_v10  ;;  %2412 = vtanh.f32 %v785_v10  ;;  %v2098_v12 = vpop.f32.mrb[23].mxu0 }
 0xb82   :  { %2414 = vpow2.f32 %v1719_v27 }
 0xb8a   :  { %v2413_v46 = vpop.eup %2412 }
 0xb8b   :  { %795 = vrot.lane.b32.xlu0 %v2413_v46, %s2657_s1 }
 0xb8c   :  { %v2415_v28 = vpop.eup %2414 }
 0xb8d   :  { %v789_v29 = vadd.f32 1.0, %v2415_v28 }
 0xb8f   :  { %2416 = vrcp.f32 %v789_v29 }
 0xb99   :  { %v2417_v30 = vpop.eup %2416 }
 0xb9a   :  { %793 = vrot.lane.b32.xlu1 %v2417_v30, %s2663_s26 }
 0xb9d   :  { %v1070_v45 = vpop.f32.mrb[24].mxu0 }
 0xb9e   :  { %v1076_v33 = vadd.f32 %v1070_v45, %v927_v19  ;;  %v2141_v34 = vpop.f32.mrb[25].mxu0 }
 0xb9f   :  { %v1073_v35 = vpop.f32.mrb[26].mxu0 }
 0xba0   :  { %v1738_v36 = vmul.f32 -1.442695, %v1076_v33  ;;  %2418 = vtanh.f32 %v1076_v33  ;;  %v2142_v37 = vpop.f32.mrb[27].mxu0  ;;  %v935_v33 = vadd.f32 %v3077_v60, %v3168_v31 }
 0xba2   :  { %2420 = vpow2.f32 %v1738_v36 }
 0xbaa   :  { %v2419_v38 = vpop.eup %2418 }
 0xbab   :  { %1086 = vrot.lane.b32.xlu0 %v2419_v38, %s2657_s1 }
 0xbac   :  { %v2421_v39 = vpop.eup %2420 }
 0xbad   :  { %v1080_v40 = vadd.f32 1.0, %v2421_v39 }
 0xbaf   :  { %2422 = vrcp.f32 %v1080_v40 }
 0xbb9   :  { %v2423_v42 = vpop.eup %2422 }
 0xbba   :  { %1088 = vrot.lane.b32.xlu0 %v2423_v42, %s2662_s24  ;;  %1084 = vrot.lane.b32.xlu1 %v2423_v42, %s2663_s26 }
 0xbbe   :  { %797 = vrot.lane.b32.xlu1 %v2417_v30, %s2662_s24 }
 0xbfd   :  { %v796_v41 = vpop.permute.xlu0 %795 }
 0xbfe   :  { %v800_v47 = vmul.f32 %v2417_v30, %v796_v41 }
 0xc0c   :  { %v794_v5 = vpop.permute.xlu1 %793 }
 0xc0d   :  { %v799_v48 = vmul.f32 %v794_v5, %v3119_v23 }
 0xc0f   :  { %v801_v49 = vadd.f32 %v800_v47, %v799_v48 }
 0xc11   :  { %807 = vst [vmem:[#allocation15] sm:$0xff] %v801_v49  ;;  %2424 = vtanh.f32 %v801_v49 }
 0xc1b   :  { %v2425_v55 = vpop.eup %2424 }
 0xc1d   :  { %v1087_v17 = vpop.permute.xlu0 %1086 }
 0xc1e   :  { %v1091_v52 = vmul.f32 %v2423_v42, %v1087_v17 }
 0xc2c   :  { %v1085_v51 = vpop.permute.xlu1 %1084  ;;  %v1089_v59 = vpop.permute.xlu0 %1088 }
 0xc2d   :  { %v1090_v53 = vmul.f32 %v1085_v51, %v985_v50 }
 0xc2f   :  { %v1092_v54 = vadd.f32 %v1091_v52, %v1090_v53 }
 0xc30   :  { %v798_v57 = vpop.permute.xlu1 %797 }
 0xc31   :  { %2426 = vtanh.f32 %v1092_v54  ;;  %v803_v58 = vmul.f32 %v2425_v55, %v798_v57 }
 0xc33   :  { %806 = vst [vmem:[#allocation13] sm:$0xff] %v803_v58  ;;  %v819_v32 = vpack.c.bf16 %v803_v58, %v3122_v1 }
 0xc35   :  { %2120 = vmatmul.mubr.bf16.gmra.mrb[20].mxu1 %v819_v32 }
 0xc36   :  { %2159 = vmatprep.mubr.msk.bf16.mxu1 %vm2661_vm0, %v2660_v0 }
 0xc3b   :  { %v2427_v56 = vpop.eup %2426 }
 0xc3c   :  { %v1094_v43 = vmul.f32 %v2427_v56, %v1089_v59 }
 0xc3e   :  { %v1096_v18 = vpack.c.bf16 %v1094_v43, %v1094_v43 }
 0xc40   :  { %2160 = vmatmul.mubr.bf16.vlgmr.msra.gmra.mrb[24].mxu1 %v1096_v18 }
 0xc41   :  { %2184 = vmatpush3.bf16.msra.mxu1 %v3084_v62  ;;  %2199 = vmatprep.mubr.msk.bf16.mxu1 %vm2661_vm0, %v2660_v0 }
 0xc42   :  { %2185 = vmatprep.subr.bf16.mxu1 %v2660_v0 }
 0xc45   :  { %2186 = vmatpush3.bf16.msra.mxu1 %v3090_v3 }
 0xc46   :  { %2187 = vmatprep.subr.bf16.mxu1 %v2660_v0 }
 0xc49   :  { %2188 = vmatpush3.bf16.msra.mxu1 %v3094_v6 }
 0xc4a   :  { %2189 = vmatprep.subr.bf16.mxu1 %v2660_v0 }
 0xc4d   :  { %2190 = vmatpush3.bf16.msra.mxu1 %v3098_v8 }
 0xc4e   :  { %2191 = vmatprep.subr.bf16.mxu1 %v2660_v0 }
 0xc51   :  { %2192 = vmatpush3.bf16.msra.mxu1 %v3102_v13 }
 0xc52   :  { %2193 = vmatprep.subr.bf16.mxu1 %v2660_v0 }
 0xc55   :  { %2194 = vmatpush3.bf16.msra.mxu1 %v3106_v14 }
 0xc56   :  { %2195 = vmatprep.subr.bf16.mxu1 %v2660_v0 }
 0xc59   :  { %2196 = vmatpush3.bf16.msra.mxu1 %v3110_v44 }
 0xc5a   :  { %2197 = vmatprep.subr.bf16.mxu1 %v2660_v0 }
 0xc5d   :  { %2198 = vmatpush3.bf16.msra.mxu1 %v3114_v16 }
 0xc5e   :  { %2223 = vmatprep.subr.bf16.mxu1 %v2660_v0 }
 0xd08   :  { %v3199_v20 = vpop.f32.mrb[20].mxu1 }
 0xd09   :  { %v3201_v21 = vpop.f32.mrb[21].mxu1 }
 0xd0a   :  { %v3203_v22 = vpop.f32.mrb[22].mxu1 }
 0xd0b   :  { %v3205_v23 = vpop.f32.mrb[23].mxu1 }
 0xd13   :  { %v1131_v25 = vpop.f32.mrb[24].mxu1 }
 0xd14   :  { %v1137_v1 = vadd.f32 %v1131_v25, %v930_v24  ;;  %v2161_v2 = vpop.f32.mrb[25].mxu1 }
 0xd15   :  { %v1134_v4 = vpop.f32.mrb[26].mxu1 }
 0xd16   :  { %v1739_v7 = vmul.f32 -1.442695, %v1137_v1  ;;  %2428 = vtanh.f32 %v1137_v1  ;;  %v2162_v9 = vpop.f32.mrb[27].mxu1 }
 0xd18   :  { %2430 = vpow2.f32 %v1739_v7 }
 0xd20   :  { %v2429_v15 = vpop.eup %2428 }
 0xd21   :  { %1147 = vrot.lane.b32.xlu0 %v2429_v15, %s2657_s1 }
 0xd22   :  { %v2431_v10 = vpop.eup %2430 }
 0xd23   :  { %v1141_v26 = vadd.f32 1.0, %v2431_v10 }
 0xd25   :  { %2432 = vrcp.f32 %v1141_v26 }
 0xd2f   :  { %v2433_v11 = vpop.eup %2432 }
 0xd30   :  { %1145 = vrot.lane.b32.xlu1 %v2433_v11, %s2663_s26 }
 0xd34   :  { %1149 = vrot.lane.b32.xlu1 %v2433_v11, %s2662_s24 }
 0xd93   :  { %v1148_v63 = vpop.permute.xlu0 %1147 }
 0xd94   :  { %v1152_v12 = vmul.f32 %v2433_v11, %v1148_v63  ;;  %v943_v11 = vadd.f32 %v3168_v31, %v3201_v21 }
 0xda2   :  { %v1146_v27 = vpop.permute.xlu1 %1145 }
 0xda3   :  { %v1151_v46 = vmul.f32 %v1146_v27, %v1092_v54  ;;  %v938_v54 = vadd.f32 %v3082_v61, %v3168_v31 }
 0xda5   :  { %v1153_v28 = vadd.f32 %v1152_v12, %v1151_v46 }
 0xda6   :  { %v1150_v30 = vpop.permute.xlu1 %1149 }
 0xda7   :  { %2434 = vtanh.f32 %v1153_v28 }
 0xdb1   :  { %v2435_v29 = vpop.eup %2434 }
 0xdb2   :  { %v1155_v19 = vmul.f32 %v2435_v29, %v1150_v30 }
 0xdb4   :  { %v1157_v45 = vpack.c.bf16 %v1155_v19, %v1155_v19 }
 0xdb6   :  { %2180 = vmatmul.mubr.bf16.vlgmr.msra.gmra.mrb[28].mxu0 %v1157_v45 }
 0xdb7   :  { %2204 = vmatpush3.bf16.msra.mxu0 %v3084_v62  ;;  %2219 = vmatprep.mubr.msk.bf16.mxu0 %vm2661_vm0, %v2660_v0 }
 0xdb8   :  { %2205 = vmatprep.subr.bf16.mxu0 %v2660_v0 }
 0xdbb   :  { %2206 = vmatpush3.bf16.msra.mxu0 %v3090_v3 }
 0xdbc   :  { %2207 = vmatprep.subr.bf16.mxu0 %v2660_v0 }
 0xdbf   :  { %2208 = vmatpush3.bf16.msra.mxu0 %v3094_v6 }
 0xdc0   :  { %2209 = vmatprep.subr.bf16.mxu0 %v2660_v0 }
 0xdc3   :  { %2210 = vmatpush3.bf16.msra.mxu0 %v3098_v8 }
 0xdc4   :  { %2211 = vmatprep.subr.bf16.mxu0 %v2660_v0 }
 0xdc7   :  { %2212 = vmatpush3.bf16.msra.mxu0 %v3102_v13 }
 0xdc8   :  { %2213 = vmatprep.subr.bf16.mxu0 %v2660_v0 }
 0xdcb   :  { %2214 = vmatpush3.bf16.msra.mxu0 %v3106_v14 }
 0xdcc   :  { %2215 = vmatprep.subr.bf16.mxu0 %v2660_v0 }
 0xdcf   :  { %2216 = vmatpush3.bf16.msra.mxu0 %v3110_v44 }
 0xdd0   :  { %2217 = vmatprep.subr.bf16.mxu0 %v2660_v0 }
 0xdd3   :  { %2218 = vmatpush3.bf16.msra.mxu0 %v3114_v16 }
 0xdd4   :  { %2243 = vmatprep.subr.bf16.mxu0 %v2660_v0 }
 0xe89   :  { %v1192_v34 = vpop.f32.mrb[28].mxu0 }
 0xe8a   :  { %v1198_v35 = vadd.f32 %v1192_v34, %v935_v33  ;;  %v2181_v36 = vpop.f32.mrb[29].mxu0 }
 0xe8b   :  { %v1195_v37 = vpop.f32.mrb[30].mxu0 }
 0xe8c   :  { %v1740_v38 = vmul.f32 -1.442695, %v1198_v35  ;;  %2436 = vtanh.f32 %v1198_v35  ;;  %v2182_v39 = vpop.f32.mrb[31].mxu0 }
 0xe8e   :  { %2438 = vpow2.f32 %v1740_v38 }
 0xe96   :  { %v2437_v40 = vpop.eup %2436 }
 0xe97   :  { %1208 = vrot.lane.b32.xlu1 %v2437_v40, %s2657_s1 }
 0xe98   :  { %v2439_v42 = vpop.eup %2438 }
 0xe99   :  { %v1202_v41 = vadd.f32 1.0, %v2439_v42 }
 0xe9b   :  { %2440 = vrcp.f32 %v1202_v41 }
 0xea5   :  { %v2441_v5 = vpop.eup %2440 }
 0xea6   :  { %1206 = vrot.lane.b32.xlu0 %v2441_v5, %s2663_s26 }
 0xeaa   :  { %1210 = vrot.lane.b32.xlu0 %v2441_v5, %s2662_s24 }
 0xf09   :  { %v1209_v60 = vpop.permute.xlu1 %1208 }
 0xf0a   :  { %v1213_v48 = vmul.f32 %v2441_v5, %v1209_v60 }
 0xf18   :  { %v1207_v47 = vpop.permute.xlu0 %1206 }
 0xf19   :  { %v1212_v49 = vmul.f32 %v1207_v47, %v1153_v28 }
 0xf1b   :  { %v1214_v17 = vadd.f32 %v1213_v48, %v1212_v49 }
 0xf1c   :  { %v1211_v51 = vpop.permute.xlu0 %1210 }
 0xf1d   :  { %2442 = vtanh.f32 %v1214_v17 }
 0xf27   :  { %v2443_v50 = vpop.eup %2442 }
 0xf28   :  { %v1216_v52 = vmul.f32 %v2443_v50, %v1211_v51 }
 0xf2a   :  { %v1218_v53 = vpack.c.bf16 %v1216_v52, %v1216_v52 }
 0xf2c   :  { %2200 = vmatmul.mubr.bf16.vlgmr.msra.gmra.mrb[28].mxu1 %v1218_v53 }
 0xf2d   :  { %2224 = vmatpush3.bf16.msra.mxu1 %v3084_v62  ;;  %2239 = vmatprep.mubr.msk.bf16.mxu1 %vm2661_vm0, %v2660_v0 }
 0xf2e   :  { %2225 = vmatprep.subr.bf16.mxu1 %v2660_v0 }
 0xf31   :  { %2226 = vmatpush3.bf16.msra.mxu1 %v3090_v3 }
 0xf32   :  { %2227 = vmatprep.subr.bf16.mxu1 %v2660_v0 }
 0xf35   :  { %2228 = vmatpush3.bf16.msra.mxu1 %v3094_v6 }
 0xf36   :  { %2229 = vmatprep.subr.bf16.mxu1 %v2660_v0 }
 0xf39   :  { %2230 = vmatpush3.bf16.msra.mxu1 %v3098_v8 }
 0xf3a   :  { %2231 = vmatprep.subr.bf16.mxu1 %v2660_v0 }
 0xf3d   :  { %2232 = vmatpush3.bf16.msra.mxu1 %v3102_v13 }
 0xf3e   :  { %2233 = vmatprep.subr.bf16.mxu1 %v2660_v0 }
 0xf41   :  { %2234 = vmatpush3.bf16.msra.mxu1 %v3106_v14 }
 0xf42   :  { %2235 = vmatprep.subr.bf16.mxu1 %v2660_v0 }
 0xf45   :  { %2236 = vmatpush3.bf16.msra.mxu1 %v3110_v44 }
 0xf46   :  { %2237 = vmatprep.subr.bf16.mxu1 %v2660_v0 }
 0xf49   :  { %2238 = vmatpush3.bf16.msra.mxu1 %v3114_v16 }
 0xf4a   :  { %2263 = vmatprep.subr.bf16.mxu1 %v2660_v0 }
 0xfff   :  { %v1253_v55 = vpop.f32.mrb[28].mxu1 }
0x1000   :  { %v1259_v57 = vadd.f32 %v1253_v55, %v938_v54  ;;  %v2201_v58 = vpop.f32.mrb[29].mxu1  ;;  %v951_v54 = vadd.f32 %v3199_v20, %v3168_v31 }
0x1001   :  { %v1256_v32 = vpop.f32.mrb[30].mxu1 }
0x1002   :  { %v1741_v56 = vmul.f32 -1.442695, %v1259_v57  ;;  %2444 = vtanh.f32 %v1259_v57  ;;  %v2202_v59 = vpop.f32.mrb[31].mxu1 }
0x1004   :  { %2446 = vpow2.f32 %v1741_v56 }
0x100c   :  { %v2445_v43 = vpop.eup %2444 }
0x100d   :  { %1269 = vrot.lane.b32.xlu0 %v2445_v43, %s2657_s1 }
0x100e   :  { %v2447_v18 = vpop.eup %2446 }
0x100f   :  { %v1263_v24 = vadd.f32 1.0, %v2447_v18 }
0x1011   :  { %2448 = vrcp.f32 %v1263_v24 }
0x101b   :  { %v2449_v25 = vpop.eup %2448 }
0x101c   :  { %1267 = vrot.lane.b32.xlu1 %v2449_v25, %s2663_s26 }
0x1020   :  { %1271 = vrot.lane.b32.xlu1 %v2449_v25, %s2662_s24 }
0x107f   :  { %v1270_v61 = vpop.permute.xlu0 %1269 }
0x1080   :  { %v1274_v2 = vmul.f32 %v2449_v25, %v1270_v61 }
0x108e   :  { %v1268_v1 = vpop.permute.xlu1 %1267 }
0x108f   :  { %v1273_v4 = vmul.f32 %v1268_v1, %v1214_v17 }
0x1091   :  { %v1275_v7 = vadd.f32 %v1274_v2, %v1273_v4 }
0x1092   :  { %v1272_v15 = vpop.permute.xlu1 %1271 }
0x1093   :  { %2450 = vtanh.f32 %v1275_v7 }
0x109d   :  { %v2451_v9 = vpop.eup %2450 }
0x109e   :  { %v1277_v10 = vmul.f32 %v2451_v9, %v1272_v15 }
0x10a0   :  { %v1279_v26 = vpack.c.bf16 %v1277_v10, %v1277_v10 }
0x10a2   :  { %2220 = vmatmul.mubr.bf16.vlgmr.msra.gmra.mrb[32].mxu0 %v1279_v26  ;;  %v954_v26 = vadd.f32 %v3203_v22, %v3168_v31  ;;  %v2351_v22 = vld [vmem:[#allocation10 + $0x18] sm:$0xff]  }
0x10a3   :  { %2244 = vmatpush3.bf16.msra.mxu0 %v3084_v62  ;;  %2259 = vmatprep.mubr.msk.bf16.mxu0 %vm2661_vm0, %v2660_v0 }
0x10a4   :  { %2245 = vmatprep.subr.bf16.mxu0 %v2660_v0 }
0x10a7   :  { %2246 = vmatpush3.bf16.msra.mxu0 %v3090_v3 }
0x10a8   :  { %2247 = vmatprep.subr.bf16.mxu0 %v2660_v0 }
0x10ab   :  { %2248 = vmatpush3.bf16.msra.mxu0 %v3094_v6 }
0x10ac   :  { %2249 = vmatprep.subr.bf16.mxu0 %v2660_v0 }
0x10af   :  { %2250 = vmatpush3.bf16.msra.mxu0 %v3098_v8 }
0x10b0   :  { %2251 = vmatprep.subr.bf16.mxu0 %v2660_v0 }
0x10b3   :  { %2252 = vmatpush3.bf16.msra.mxu0 %v3102_v13 }
0x10b4   :  { %2253 = vmatprep.subr.bf16.mxu0 %v2660_v0 }
0x10b7   :  { %2254 = vmatpush3.bf16.msra.mxu0 %v3106_v14 }
0x10b8   :  { %2255 = vmatprep.subr.bf16.mxu0 %v2660_v0 }
0x10bb   :  { %2256 = vmatpush3.bf16.msra.mxu0 %v3110_v44 }
0x10bc   :  { %2257 = vmatprep.subr.bf16.mxu0 %v2660_v0 }
0x10bf   :  { %2258 = vmatpush3.bf16.msra.mxu0 %v3114_v16 }
0x10c0   :  { %2283 = vmatprep.subr.bf16.mxu0 %v2660_v0 }
0x1175   :  { %v1314_v63 = vpop.f32.mrb[32].mxu0 }
0x1176   :  { %v1320_v27 = vadd.f32 %v1314_v63, %v943_v11  ;;  %v2221_v12 = vpop.f32.mrb[33].mxu0 }
0x1177   :  { %v1317_v46 = vpop.f32.mrb[34].mxu0  ;;  %v2348_v12 = vld [vmem:[#allocation10] sm:$0xff]  }
0x1178   :  { %v1742_v28 = vmul.f32 -1.442695, %v1320_v27  ;;  %2452 = vtanh.f32 %v1320_v27  ;;  %v2222_v29 = vpop.f32.mrb[35].mxu0 }
0x117a   :  { %2454 = vpow2.f32 %v1742_v28 }
0x1182   :  { %v2453_v30 = vpop.eup %2452 }
0x1183   :  { %1330 = vrot.lane.b32.xlu1 %v2453_v30, %s2657_s1  ;;  %v2349_v30 = vld [vmem:[#allocation10 + $0x8] sm:$0xff]  }
0x1184   :  { %v2455_v19 = vpop.eup %2454 }
0x1185   :  { %v1324_v45 = vadd.f32 1.0, %v2455_v19  ;;  %v2350_v19 = vld [vmem:[#allocation10 + $0x10] sm:$0xff]  }
0x1187   :  { %2456 = vrcp.f32 %v1324_v45 }
0x1191   :  { %v2457_v33 = vpop.eup %2456 }
0x1192   :  { %1328 = vrot.lane.b32.xlu0 %v2457_v33, %s2663_s26 }
0x1196   :  { %1332 = vrot.lane.b32.xlu0 %v2457_v33, %s2662_s24 }
0x11f5   :  { %v1331_v21 = vpop.permute.xlu1 %1330 }
0x11f6   :  { %v1335_v35 = vmul.f32 %v2457_v33, %v1331_v21  ;;  %v2352_v21 = vld [vmem:[#allocation10 + $0x20] sm:$0xff]  }
0x1204   :  { %v1329_v34 = vpop.permute.xlu0 %1328 }
0x1205   :  { %v1334_v36 = vmul.f32 %v1329_v34, %v1275_v7  ;;  %v2353_v34 = vld [vmem:[#allocation10 + $0x28] sm:$0xff]  }
0x1207   :  { %v1336_v37 = vadd.f32 %v1335_v35, %v1334_v36  ;;  %v2354_v35 = vld [vmem:[#allocation10 + $0x30] sm:$0xff]  }
0x1208   :  { %v1333_v39 = vpop.permute.xlu0 %1332 }
0x1209   :  { %2458 = vtanh.f32 %v1336_v37 }
0x1213   :  { %v2459_v38 = vpop.eup %2458 }
0x1214   :  { %v1338_v40 = vmul.f32 %v2459_v38, %v1333_v39 }
0x1216   :  { %v1340_v42 = vpack.c.bf16 %v1338_v40, %v1338_v40 }
0x1218   :  { %2240 = vmatmul.mubr.bf16.vlgmr.msra.gmra.mrb[32].mxu1 %v1340_v42 }
0x1219   :  { %2264 = vmatpush3.bf16.msra.mxu1 %v3084_v62  ;;  %2279 = vmatprep.mubr.msk.bf16.mxu1 %vm2661_vm0, %v2660_v0  ;;  %v946_v62 = vadd.f32 %v3168_v31, %v3205_v23 }
0x121a   :  { %2265 = vmatprep.subr.bf16.mxu1 %v2660_v0 }
0x121d   :  { %2266 = vmatpush3.bf16.msra.mxu1 %v3090_v3 }
0x121e   :  { %2267 = vmatprep.subr.bf16.mxu1 %v2660_v0 }
0x1221   :  { %2268 = vmatpush3.bf16.msra.mxu1 %v3094_v6 }
0x1222   :  { %2269 = vmatprep.subr.bf16.mxu1 %v2660_v0 }
0x1225   :  { %2270 = vmatpush3.bf16.msra.mxu1 %v3098_v8 }
0x1226   :  { %2271 = vmatprep.subr.bf16.mxu1 %v2660_v0 }
0x1229   :  { %2272 = vmatpush3.bf16.msra.mxu1 %v3102_v13 }
0x122a   :  { %2273 = vmatprep.subr.bf16.mxu1 %v2660_v0 }
0x122d   :  { %2274 = vmatpush3.bf16.msra.mxu1 %v3106_v14 }
0x122e   :  { %2275 = vmatprep.subr.bf16.mxu1 %v2660_v0 }
0x1231   :  { %2276 = vmatpush3.bf16.msra.mxu1 %v3110_v44 }
0x1232   :  { %2277 = vmatprep.subr.bf16.mxu1 %v2660_v0 }
0x1235   :  { %2278 = vmatpush3.bf16.msra.mxu1 %v3114_v16 }
0x12eb   :  { %v1375_v3 = vpop.f32.mrb[32].mxu1 }
0x12ec   :  { %v1381_v6 = vadd.f32 %v1375_v3, %v946_v62  ;;  %v2241_v8 = vpop.f32.mrb[33].mxu1 }
0x12ed   :  { %v1378_v41 = vpop.f32.mrb[34].mxu1 }
0x12ee   :  { %v1743_v13 = vmul.f32 -1.442695, %v1381_v6  ;;  %2460 = vtanh.f32 %v1381_v6  ;;  %v2242_v5 = vpop.f32.mrb[35].mxu1 }
0x12f0   :  { %2462 = vpow2.f32 %v1743_v13 }
0x12f8   :  { %v2461_v14 = vpop.eup %2460 }
0x12f9   :  { %1391 = vrot.lane.b32.xlu0 %v2461_v14, %s2657_s1 }
0x12fa   :  { %v2463_v60 = vpop.eup %2462 }
0x12fb   :  { %v1385_v44 = vadd.f32 1.0, %v2463_v60 }
0x12fd   :  { %2464 = vrcp.f32 %v1385_v44 }
0x1307   :  { %v2465_v47 = vpop.eup %2464 }
0x1308   :  { %1389 = vrot.lane.b32.xlu1 %v2465_v47, %s2663_s26 }
0x130c   :  { %1393 = vrot.lane.b32.xlu1 %v2465_v47, %s2662_s24 }
0x136b   :  { %v1392_v16 = vpop.permute.xlu0 %1391 }
0x136c   :  { %v1396_v48 = vmul.f32 %v2465_v47, %v1392_v16 }
0x137a   :  { %v1390_v23 = vpop.permute.xlu1 %1389 }
0x137b   :  { %v1395_v49 = vmul.f32 %v1390_v23, %v1336_v37  ;;  %v2355_v37 = vld [vmem:[#allocation10 + $0x38] sm:$0xff]  }
0x137d   :  { %v1397_v17 = vadd.f32 %v1396_v48, %v1395_v49 }
0x137e   :  { %v1394_v51 = vpop.permute.xlu1 %1393 }
0x137f   :  { %2466 = vtanh.f32 %v1397_v17 }
0x1389   :  { %v2467_v50 = vpop.eup %2466 }
0x138a   :  { %v1399_v52 = vmul.f32 %v2467_v50, %v1394_v51 }
0x138c   :  { %v1401_v53 = vpack.c.bf16 %v1399_v52, %v1399_v52 }
0x138e   :  { %2260 = vmatmul.mubr.bf16.vlgmr.msra.gmra.mrb[36].mxu0 %v1401_v53 }
0x138f   :  { %2299 = vmatprep.mubr.msk.bf16.mxu0 %vm2661_vm0, %v2660_v0  ;;  %2284 = vmatpush3.bf16.msra.mxu0 %v2348_v12 }
0x1390   :  { %2285 = vmatprep.subr.bf16.mxu0 %v2660_v0 }
0x1393   :  { %2286 = vmatpush3.bf16.msra.mxu0 %v2349_v30 }
0x1394   :  { %2287 = vmatprep.subr.bf16.mxu0 %v2660_v0 }
0x1397   :  { %2288 = vmatpush3.bf16.msra.mxu0 %v2350_v19 }
0x1398   :  { %2289 = vmatprep.subr.bf16.mxu0 %v2660_v0 }
0x139b   :  { %2290 = vmatpush3.bf16.msra.mxu0 %v2351_v22 }
0x139c   :  { %2291 = vmatprep.subr.bf16.mxu0 %v2660_v0 }
0x139f   :  { %2292 = vmatpush3.bf16.msra.mxu0 %v2352_v21 }
0x13a0   :  { %2293 = vmatprep.subr.bf16.mxu0 %v2660_v0 }
0x13a3   :  { %2294 = vmatpush3.bf16.msra.mxu0 %v2353_v34 }
0x13a4   :  { %2295 = vmatprep.subr.bf16.mxu0 %v2660_v0 }
0x13a7   :  { %2296 = vmatpush3.bf16.msra.mxu0 %v2354_v35 }
0x13a8   :  { %2297 = vmatprep.subr.bf16.mxu0 %v2660_v0 }
0x13ab   :  { %2298 = vmatpush3.bf16.msra.mxu0 %v2355_v37 }
0x1461   :  { %v1436_v55 = vpop.f32.mrb[36].mxu0 }
0x1462   :  { %v1442_v57 = vadd.f32 %v1436_v55, %v951_v54  ;;  %v2261_v58 = vpop.f32.mrb[37].mxu0 }
0x1463   :  { %v1439_v32 = vpop.f32.mrb[38].mxu0 }
0x1464   :  { %v1744_v56 = vmul.f32 -1.442695, %v1442_v57  ;;  %2468 = vtanh.f32 %v1442_v57  ;;  %v2262_v59 = vpop.f32.mrb[39].mxu0 }
0x1466   :  { %2470 = vpow2.f32 %v1744_v56 }
0x146e   :  { %v2469_v43 = vpop.eup %2468 }
0x146f   :  { %1452 = vrot.lane.b32.xlu1 %v2469_v43, %s2657_s1 }
0x1470   :  { %v2471_v18 = vpop.eup %2470 }
0x1471   :  { %v1446_v24 = vadd.f32 1.0, %v2471_v18 }
0x1473   :  { %2472 = vrcp.f32 %v1446_v24 }
0x147d   :  { %v2473_v25 = vpop.eup %2472 }
0x147e   :  { %1450 = vrot.lane.b32.xlu0 %v2473_v25, %s2663_s26 }
0x1482   :  { %1454 = vrot.lane.b32.xlu0 %v2473_v25, %s2662_s24 }
0x14e1   :  { %v1453_v20 = vpop.permute.xlu1 %1452 }
0x14e2   :  { %v1457_v1 = vmul.f32 %v2473_v25, %v1453_v20 }
0x14f0   :  { %v1451_v61 = vpop.permute.xlu0 %1450 }
0x14f1   :  { %v1456_v2 = vmul.f32 %v1451_v61, %v1397_v17 }
0x14f3   :  { %v1458_v4 = vadd.f32 %v1457_v1, %v1456_v2 }
0x14f4   :  { %v1455_v9 = vpop.permute.xlu0 %1454 }
0x14f5   :  { %2474 = vtanh.f32 %v1458_v4 }
0x14ff   :  { %v2475_v7 = vpop.eup %2474 }
0x1500   :  { %v1460_v15 = vmul.f32 %v2475_v7, %v1455_v9 }
0x1502   :  { %v1462_v10 = vpack.c.bf16 %v1460_v15, %v1460_v15 }
0x1504   :  { %2280 = vmatmul.mubr.bf16.vlgmr.msra.gmra.mrb[36].mxu1 %v1462_v10 }
0x15d7   :  { %v1497_v11 = vpop.f32.mrb[36].mxu1 }
0x15d8   :  { %v1503_v63 = vadd.f32 %v1497_v11, %v954_v26  ;;  %v2281_v27 = vpop.f32.mrb[37].mxu1 }
0x15d9   :  { %v1500_v46 = vpop.f32.mrb[38].mxu1 }
0x15da   :  { %v1745_v28 = vmul.f32 -1.442695, %v1503_v63  ;;  %2476 = vtanh.f32 %v1503_v63  ;;  %v2282_v29 = vpop.f32.mrb[39].mxu1 }
0x15dc   :  { %2478 = vpow2.f32 %v1745_v28 }
0x15e4   :  { %v2477_v31 = vpop.eup %2476 }
0x15e5   :  { %1513 = vrot.lane.b32.xlu0 %v2477_v31, %s2657_s1  ;;  %s1660_s1 = sshll.u32 %s2664_s6, 4  ;;  %s1661_s1 = int_to_ptr.vmem [resolvable:$true] %s1660_s1 }
0x15e6   :  { %v2479_v45 = vpop.eup %2478  ;;  %s2576_s23 = scalar_lea.vmem %s1661_s1, 256  ;;  %p2581_p5 = scmp.lt.s32.totalorder %s1661_s1, %s1661_s1 }
0x15e7   :  { %v1507_v33 = vadd.f32 1.0, %v2479_v45  ;;  %p2577_p4 = scmp.ne.s32.totalorder %s1661_s1, %s2576_s23  ;;  %p2582_p6 = scmp.lt.s32.totalorder %s2576_s23, %s2576_s23 }
0x15e9   :  { %2480 = vrcp.f32 %v1507_v33  ;;  %p2583_p7 = por %p2582_p6, %p2581_p5 }
0x15eb   :  { %p2584_p8 = pnand %p2583_p7, %p2577_p4 }
0x15f3   :  { %v2481_v36 = vpop.eup %2480 }
0x15f4   :  { %1511 = vrot.lane.b32.xlu1 %v2481_v36, %s2663_s26 }
0x15f8   :  { %1515 = vrot.lane.b32.xlu1 %v2481_v36, %s2662_s24 }
0x1657   :  { %v1514_v38 = vpop.permute.xlu0 %1513 }
0x1658   :  { %v1518_v40 = vmul.f32 %v2481_v36, %v1514_v38 }
0x1666   :  { %v1512_v39 = vpop.permute.xlu1 %1511 }
0x1667   :  { %v1517_v42 = vmul.f32 %v1512_v39, %v1458_v4 }
0x1669   :  { %v1519_v62 = vadd.f32 %v1518_v40, %v1517_v42 }
0x166a   :  { %v1516_v6 = vpop.permute.xlu1 %1515 }
0x166b   :  { %2482 = vtanh.f32 %v1519_v62  ;;  %1525 = vst [vmem:[#allocation15 + $0x8] sm:$0xff] %v1519_v62 }
0x1675   :  { %v2483_v3 = vpop.eup %2482 }
0x1676   :  { %v1521_v8 = vmul.f32 %v2483_v3, %v1516_v6 }
0x1678   :  { %1523 = vst [vmem:[#allocation13 + $0x8] sm:$0xff] %v1521_v8  ;;  %v1526_v41 = vpack.c.bf16 %v1521_v8, %v1521_v8 }
0x167a   :  { %2300 = vmatmul.mubr.bf16.vlgmr.msra.gmra.mrb[40].mxu0 %v1526_v41 }
0x167b   :  { %2587 = shalt.err (!%p2584_p8)
}
0x167c   :  { %s2588_s24 = scalar_lea.hbm %s3377_s10, 256 }
0x167d   :  { %p2589_p9 = scmp.ne.s32.totalorder %s3377_s10, %s2588_s24  ;;  %p2592_p10 = scmp.lt.u32.totalorder %s2588_s24, %s3377_s10 }
0x167f   :  { %p2594_p11 = pnand %p2592_p10, %p2589_p9 }
0x1681   :  { %2597 = shalt.err (!%p2594_p11)
}
0x1682   :  { %1666 = dma.vmem_to_hbm [thread:$0]  %s1661_s1, 256, %s3377_s10, [#allocation14], %s2654_s29, %s2654_s29, %s2655_s30  }
0x1683   :  { %s2665_s25 = smov [#allocation15]  }
0x1684   :  { %s1672_s7 = sshll.u32 %s2665_s25, 4  ;;  %s1673_s7 = int_to_ptr.vmem [resolvable:$true] %s1672_s7 }
0x1685   :  { %s2598_s13 = scalar_lea.vmem %s1673_s7, 256  ;;  %p2603_p13 = scmp.lt.s32.totalorder %s1673_s7, %s1673_s7 }
0x1686   :  { %p2599_p12 = scmp.ne.s32.totalorder %s1673_s7, %s2598_s13  ;;  %p2604_p0 = scmp.lt.s32.totalorder %s2598_s13, %s2598_s13 }
0x1688   :  { %p2605_p1 = por %p2604_p0, %p2603_p13 }
0x168a   :  { %p2606_p2 = pnand %p2605_p1, %p2599_p12 }
0x168c   :  { %2609 = shalt.err (!%p2606_p2)
}
0x168d   :  { %s2610_s16 = scalar_lea.hbm %s3378_s11, 256 }
0x168e   :  { %p2611_p3 = scmp.ne.s32.totalorder %s3378_s11, %s2610_s16  ;;  %p2614_p4 = scmp.lt.u32.totalorder %s2610_s16, %s3378_s11 }
0x1690   :  { %p2616_p5 = pnand %p2614_p4, %p2611_p3 }
0x1692   :  { %2619 = shalt.err (!%p2616_p5)
}
0x1693   :  { %1678 = dma.vmem_to_hbm [thread:$0]  %s1673_s7, 256, %s3378_s11, [#allocation14], %s2654_s29, %s2654_s29, %s2655_s30  }
0x1694   :  { %v1746_v0 = vld [vmem:[%s3375_s8] ss:$0 sm:$0xff]  ;;  %s2666_s6 = smov [#allocation12]  }
0x1695   :  { %s1651_s1 = sshll.u32 %s2666_s6, 4  ;;  %s1652_s1 = int_to_ptr.vmem [resolvable:$true] %s1651_s1 }
0x1696   :  { %s2620_s11 = scalar_lea.vmem %s1652_s1, 128  ;;  %p2625_p7 = scmp.lt.s32.totalorder %s1652_s1, %s1652_s1 }
0x1697   :  { %p2621_p6 = scmp.ne.s32.totalorder %s1652_s1, %s2620_s11  ;;  %p2626_p8 = scmp.lt.s32.totalorder %s2620_s11, %s2620_s11 }
0x1699   :  { %p2627_p9 = por %p2626_p8, %p2625_p7 }
0x169b   :  { %p2628_p10 = pnand %p2627_p9, %p2621_p6 }
0x174d   :  { %v1632_v13 = vpop.f32.mrb[40].mxu0 }
0x174e   :  { %v1633_v5 = vadd.f32 %v1746_v0, %v1632_v13  ;;  %v2301_v14 = vpop.f32.mrb[41].mxu0 }
0x174f   :  { %v1635_v60 = vpop.f32.mrb[42].mxu0 }
0x1750   :  { %v1755_v44 = vmul.f32 -1.442695, %v1633_v5  ;;  %v2302_v47 = vpop.f32.mrb[43].mxu0 }
0x1752   :  { %2484 = vpow2.f32 %v1755_v44 }
0x175c   :  { %v2485_v16 = vpop.eup %2484 }
0x175d   :  { %v1641_v23 = vadd.f32 1.0, %v2485_v16 }
0x175f   :  { %2486 = vrcp.f32 %v1641_v23 }
0x1769   :  { %v2487_v48 = vpop.eup %2486 }
0x176a   :  { %1644 = vst [vmem:[#allocation12] sm:$0xff] %v2487_v48 }
0x176b   :  { %2631 = shalt.err (!%p2628_p10)
}
0x176c   :  { %s2632_s30 = scalar_lea.hbm %s3376_s9, 128 }
0x176d   :  { %p2633_p11 = scmp.ne.s32.totalorder %s3376_s9, %s2632_s30  ;;  %p2636_p12 = scmp.lt.u32.totalorder %s2632_s30, %s3376_s9 }
0x176f   :  { %p2638_p13 = pnand %p2636_p12, %p2633_p11 }
0x1771   :  { %2641 = shalt.err (!%p2638_p13)
}
0x1772   :  { %1654 = dma.vmem_to_hbm [thread:$0]  %s1652_s1, 128, %s3376_s9, [#allocation6]  }
0x1773   :  { %2648 = dma.done.wait [#allocation6], 128  }
0x1774   :  { %2649 = vsyncadd [#allocation6], 4294967168 }
0x1775   :  { %2650 = dma.done.wait [#allocation14], 512  }
0x1776   :  { %2651 = vsyncadd [#allocation14], 4294966784 }
0x1777   :  { %1688 = vsyncpa [#allocation5], 1 }
0x1778   :  { %1689 = vsyncpa [#allocation8], 1 }
0x1779   :  { %1690 = vsyncpa [#allocation11], 1 }
0x177a   :  { %1691 = vsyncpa [#allocation6], 1 }
0x177b   :  { %1692 = vsyncpa [#allocation14], 1 }

</bundles_post_ra>
